<compile_context>
chip_gen: v5e
topology: v5e:2x2
jax: 0.10.0
libtpu: 0.0.40
codegen_flags: <defaults>
</compile_context>

<pallas_src>
import functools

import jax
import jax.numpy as jnp
from jax.experimental import pallas as pl
from jax.experimental.pallas import tpu as pltpu

VMEM_SPEC = pl.BlockSpec(memory_space=pltpu.MemorySpace.VMEM)
_SUBLANE = 8
_LANE = 128


def _round_up(n, m):
    return ((n + m - 1) // m) * m


# --------------------------------------------------------------------------- #
# In-kernel helpers (operate on VMEM-resident values)
# --------------------------------------------------------------------------- #
def _shift_rows(x, rows):
    """Causal time shift in (T*B, C) time-major layout: shift down by rows = s*B
    (B padded to a multiple of 8 => whole-sublane move), zero-fill the top."""
    if rows == 0:
        return x
    tb = x.shape[0]
    if rows >= tb:
        return jnp.zeros_like(x)
    pad = jnp.zeros((rows, x.shape[1]), x.dtype)
    return jnp.concatenate([pad, x[:tb - rows, :]], axis=0)


def _causal_conv(x, w, b, *, ksize, dilation, batch):
    """Causal dilated Conv1d: accumulate K row-shifted GEMMs into an f32 result.
    x: (T*B, Cin) f32 activation; w: (K, Cin, Cout) bf16; b: (1, Cout) f32.
    Only one shifted copy is live at a time; no lane-axis tap concat."""
    x_b = x.astype(jnp.bfloat16)          # single activation cast per conv
    acc = None
    for k in range(ksize):
        shift = (ksize - 1 - k) * dilation * batch
        yk = jnp.dot(_shift_rows(x_b, shift), w[k],
                     preferred_element_type=jnp.float32)
        acc = yk if acc is None else acc + yk
    return acc + b


def _tcn_block(x, w1, b1, w2, b2, wd, bd, *, ksize, dilation, batch):
    """TemporalBlock: conv1+ReLU -> conv2+ReLU -> +residual -> ReLU (dropout=0)."""
    h = jnp.maximum(_causal_conv(x, w1, b1, ksize=ksize, dilation=dilation,
                                 batch=batch), 0.0)
    h = jnp.maximum(_causal_conv(h, w2, b2, ksize=ksize, dilation=dilation,
                                 batch=batch), 0.0)
    if wd is None:                        # Cin == Cout: structural identity residual
        res = x
    else:                                 # nn.Conv1d(Cin, Cout, 1) downsample
        res = jnp.dot(x.astype(jnp.bfloat16), wd,
                      preferred_element_type=jnp.float32) + bd
    return jnp.maximum(h + res, 0.0)


# --------------------------------------------------------------------------- #
# Single fused kernel: encoder TCN + heads + reparameterize + decoder TCN +
# dec_linear + sigmoid.  z never leaves VMEM between encoder and decoder.
# --------------------------------------------------------------------------- #
def _vae_kernel(x_ref, eps_ref, *refs, seq_len, batch, ksize, dilations,
                enc_has_ds, dec_has_ds, latent_dim, enc_out_lanes):
    pos = [0]

    def take():
        r = refs[pos[0]]
        pos[0] += 1
        return r

    T, B, L = seq_len, batch, latent_dim

    # ------------------------------ encoder TCN ------------------------------ #
    h = x_ref[...]                                        # (T*B, n_feats) f32
    for lvl, dil in enumerate(dilations):
        w1 = take()[...]; b1 = take()[...]; w2 = take()[...]; b2 = take()[...]
        if enc_has_ds[lvl]:
            wd = take()[...]; bd = take()[...]
        else:
            wd = bd = None
        h = _tcn_block(h, w1, b1, w2, b2, wd, bd,
                       ksize=ksize, dilation=dil, batch=B)

    # -------------- flatten + packed enc heads + reparameterize -------------- #
    ew = take()[...]                                      # (T*H, 2L) bf16  [mu|logvar]
    eb = take()[...]                                      # (1, 2L)  f32

    # (T*B, H) time-major -> (B, T*H): T sublane-aligned 8-row slices placed on
    # the lane axis -> one lane-dense, T*H-deep contraction for the head GEMM.
    eh = jnp.concatenate([h[t * B:(t + 1) * B, :] for t in range(T)], axis=1)
    head = jnp.dot(eh.astype(jnp.bfloat16), ew,
                   preferred_element_type=jnp.float32) + eb
    mu = head[:, :L]
    logvar = head[:, L:2 * L]
    z = mu + eps_ref[...] * jnp.exp(0.5 * logvar)         # reparameterize, in VMEM

    # --------------------------- decoder TCN + head -------------------------- #
    # latent_mode == 'repeat': one broadcast + leading-dim collapse, no concat.
    d = jnp.broadcast_to(z[None, :, :], (T, B, L)).reshape(T * B, L)
    for lvl, dil in enumerate(dilations):
        w1 = take()[...]; b1 = take()[...]; w2 = take()[...]; b2 = take()[...]
        if dec_has_ds[lvl]:
            wd = take()[...]; bd = take()[...]
        else:
            wd = bd = None
        d = _tcn_block(d, w1, b1, w2, b2, wd, bd,
                       ksize=ksize, dilation=dil, batch=B)

    dw = take()[...]                                      # (H, >=128) bf16, lane-padded
    db = take()[...]                                      # (1, >=128) f32
    enc_ref = take()
    dec_ref = take()

    y = jnp.dot(d.astype(jnp.bfloat16), dw,
                preferred_element_type=jnp.float32) + db
    # exact sigmoid via a single EUP tanh; result is in [0,1], no clip needed.
    dec_ref[...] = 0.5 * (jnp.tanh(0.5 * y) + 1.0)

    # lane-dense packed encoder output: [mu | logvar | z | zeros] -> one vst.
    pieces = [mu, logvar, z]
    pad_w = enc_out_lanes - 3 * L
    if pad_w > 0:
        pieces.append(jnp.zeros((B, pad_w), jnp.float32))
    enc_ref[...] = jnp.concatenate(pieces, axis=1)


# --------------------------------------------------------------------------- #
# Params / wrapper glue
# --------------------------------------------------------------------------- #
def init_params(key, *, latent_dim, seq_len, kernel_size, hidden_dim,
                nlevels, n_feats):
    keys = iter(jax.random.split(key, 64))

    def nrm(shape, scale=0.1):
        return (scale * jax.random.normal(next(keys), shape)).astype(jnp.float32)

    def make_tcn(n_in, channels):
        blocks = []
        c_prev = n_in
        for c_out in channels:
            blk = {
                'w1': nrm((kernel_size, c_prev, c_out)).astype(jnp.bfloat16),
                'b1': nrm((1, c_out)),
                'w2': nrm((kernel_size, c_out, c_out)).astype(jnp.bfloat16),
                'b2': nrm((1, c_out)),
            }
            if c_prev != c_out:                           # 1x1-conv downsample
                blk['wd'] = nrm((c_prev, c_out)).astype(jnp.bfloat16)
                blk['bd'] = nrm((1, c_out))
            blocks.append(blk)                            # else: identity residual
            c_prev = c_out
        return blocks

    channels = [hidden_dim] * nlevels

    # Encoder heads packed once: [enc_linear1 | enc_linear2] on the output axis.
    ew = jnp.concatenate([nrm((seq_len * hidden_dim, latent_dim)),
                          nrm((seq_len * hidden_dim, latent_dim))], axis=1)
    eb = jnp.concatenate([nrm((1, latent_dim)), nrm((1, latent_dim))], axis=1)

    # Decoder head lane-padded to >=128 output lanes so the final store is dense.
    out_lanes = _round_up(max(n_feats, _LANE), _LANE)
    dw = jnp.zeros((hidden_dim, out_lanes), jnp.float32).at[:, :n_feats].set(
        nrm((hidden_dim, n_feats)))
    db = jnp.zeros((1, out_lanes), jnp.float32).at[:, :n_feats].set(
        nrm((1, n_feats)))

    return {
        'enc_blocks': make_tcn(n_feats, channels),
        'dec_blocks': make_tcn(latent_dim, channels),
        'enc_w': ew.astype(jnp.bfloat16), 'enc_b': eb,
        'dec_w': dw.astype(jnp.bfloat16), 'dec_b': db,
    }


def _block_inputs(blocks):
    flat, has_ds = [], []
    for blk in blocks:
        flat += [blk['w1'], blk['b1'], blk['w2'], blk['b2']]
        if 'wd' in blk:
            flat += [blk['wd'], blk['bd']]
            has_ds.append(True)
        else:
            has_ds.append(False)
    return flat, tuple(has_ds)


def vae_tcn_forward(params, x, eps, *, kernel_size, nlevels):
    """x: (B, seq_len, n_feats); eps: (B, latent_dim) — the randn_like() draw."""
    B, T, F = x.shape
    L = eps.shape[1]
    dilations = tuple(2 ** i for i in range(nlevels))

    # Time-major (row = t*B_pad + b) f32 layout; batch padded to a multiple of 8
    # so every causal shift and flatten slice is sublane-aligned.
    B_pad = _round_up(B, _SUBLANE)
    x_p = jnp.pad(x.astype(jnp.float32), ((0, B_pad - B), (0, 0), (0, 0)))
    x_tb = jnp.transpose(x_p, (1, 0, 2)).reshape(T * B_pad, F)
    eps_p = jnp.pad(eps.astype(jnp.float32), ((0, B_pad - B), (0, 0)))

    enc_flat, enc_has_ds = _block_inputs(params['enc_blocks'])
    dec_flat, dec_has_ds = _block_inputs(params['dec_blocks'])
    inputs = ([x_tb, eps_p] + enc_flat + [params['enc_w'], params['enc_b']]
              + dec_flat + [params['dec_w'], params['dec_b']])

    enc_out_lanes = _round_up(max(3 * L, _LANE), _LANE)
    dec_out_lanes = params['dec_w'].shape[1]

    kern = functools.partial(
        _vae_kernel, seq_len=T, batch=B_pad, ksize=kernel_size,
        dilations=dilations, enc_has_ds=enc_has_ds, dec_has_ds=dec_has_ds,
        latent_dim=L, enc_out_lanes=enc_out_lanes)

    # TODO(synk): production sizes -> batch-tiled grid, dimension_semantics=
    # ("parallel",) and per-chip vmem_limit_bytes; single gridless call is right
    # at these micro shapes.
    enc_out, dec_out = pl.pallas_call(
        kern,
        out_shape=(jax.ShapeDtypeStruct((B_pad, enc_out_lanes), jnp.float32),
                   jax.ShapeDtypeStruct((T * B_pad, dec_out_lanes), jnp.float32)),
        in_specs=[VMEM_SPEC] * len(inputs),
        out_specs=(VMEM_SPEC, VMEM_SPEC),
    )(*inputs)

    mu = enc_out[:B, :L]
    logvar = enc_out[:B, L:2 * L]
    z = enc_out[:B, 2 * L:3 * L]
    xhat = jnp.transpose(dec_out[:, :F].reshape(T, B_pad, F), (1, 0, 2))[:B]
    return xhat, mu, logvar, z


# --------------------------------------------------------------------------- #
if __name__ == "__main__":
    LATENT, SEQ, KSIZE, HID, NLEV, NFEAT, BATCH = 16, 8, 3, 32, 2, 3, 2

    key = jax.random.PRNGKey(0)
    kp, kx, ke = jax.random.split(key, 3)
    params = init_params(kp, latent_dim=LATENT, seq_len=SEQ, kernel_size=KSIZE,
                         hidden_dim=HID, nlevels=NLEV, n_feats=NFEAT)
    x = jax.random.normal(kx, (BATCH, SEQ, NFEAT), dtype=jnp.float32)
    eps = jax.random.normal(ke, (BATCH, LATENT), dtype=jnp.float32)

    fwd = jax.jit(functools.partial(vae_tcn_forward, kernel_size=KSIZE,
                                    nlevels=NLEV))
    xhat, mu, logvar, z = fwd(params, x, eps)
    jax.block_until_ready((xhat, mu, logvar, z))

    assert xhat.shape == (BATCH, SEQ, NFEAT)
    assert mu.shape == (BATCH, LATENT)
    assert logvar.shape == (BATCH, LATENT)
    assert z.shape == (BATCH, LATENT)
    assert bool(jnp.all(jnp.isfinite(xhat)))
    assert bool(jnp.all(jnp.isfinite(mu))) and bool(jnp.all(jnp.isfinite(logvar)))
    assert bool(jnp.all((xhat >= 0.0) & (xhat <= 1.0)))   # sigmoid output range

    print("KERNEL_OK")
</pallas_src>

<mosaic_0001>
module attributes {stable_mosaic.version = 11 : i64} {
  func.func @_vae_kernel(%arg0: memref<64x3xf32, #tpu.memory_space<vmem>>, %arg1: memref<8x16xf32, #tpu.memory_space<vmem>>, %arg2: memref<3x3x32xbf16, #tpu.memory_space<vmem>>, %arg3: memref<1x32xf32, #tpu.memory_space<vmem>>, %arg4: memref<3x32x32xbf16, #tpu.memory_space<vmem>>, %arg5: memref<1x32xf32, #tpu.memory_space<vmem>>, %arg6: memref<3x32xbf16, #tpu.memory_space<vmem>>, %arg7: memref<1x32xf32, #tpu.memory_space<vmem>>, %arg8: memref<3x32x32xbf16, #tpu.memory_space<vmem>>, %arg9: memref<1x32xf32, #tpu.memory_space<vmem>>, %arg10: memref<3x32x32xbf16, #tpu.memory_space<vmem>>, %arg11: memref<1x32xf32, #tpu.memory_space<vmem>>, %arg12: memref<256x32xbf16, #tpu.memory_space<vmem>>, %arg13: memref<1x32xf32, #tpu.memory_space<vmem>>, %arg14: memref<3x16x32xbf16, #tpu.memory_space<vmem>>, %arg15: memref<1x32xf32, #tpu.memory_space<vmem>>, %arg16: memref<3x32x32xbf16, #tpu.memory_space<vmem>>, %arg17: memref<1x32xf32, #tpu.memory_space<vmem>>, %arg18: memref<16x32xbf16, #tpu.memory_space<vmem>>, %arg19: memref<1x32xf32, #tpu.memory_space<vmem>>, %arg20: memref<3x32x32xbf16, #tpu.memory_space<vmem>>, %arg21: memref<1x32xf32, #tpu.memory_space<vmem>>, %arg22: memref<3x32x32xbf16, #tpu.memory_space<vmem>>, %arg23: memref<1x32xf32, #tpu.memory_space<vmem>>, %arg24: memref<32x128xbf16, #tpu.memory_space<vmem>>, %arg25: memref<1x128xf32, #tpu.memory_space<vmem>>, %arg26: memref<8x128xf32, #tpu.memory_space<vmem>>, %arg27: memref<64x128xf32, #tpu.memory_space<vmem>>) attributes {dimension_semantics = [], scalar_prefetch = 0 : i64, scratch_operands = 0 : i64, tpu.core_type = #tpu.core_type<tc>} {
    %c0 = arith.constant 0 : index
    %c0_0 = arith.constant 0 : index
    %0 = vector.load %arg0[%c0, %c0_0] : memref<64x3xf32, #tpu.memory_space<vmem>>, vector<64x3xf32>
    %c0_1 = arith.constant 0 : index
    %c0_2 = arith.constant 0 : index
    %c0_3 = arith.constant 0 : index
    %1 = vector.load %arg2[%c0_1, %c0_2, %c0_3] : memref<3x3x32xbf16, #tpu.memory_space<vmem>>, vector<3x3x32xbf16>
    %c0_4 = arith.constant 0 : index
    %c0_5 = arith.constant 0 : index
    %2 = vector.load %arg3[%c0_4, %c0_5] : memref<1x32xf32, #tpu.memory_space<vmem>>, vector<1x32xf32>
    %c0_6 = arith.constant 0 : index
    %c0_7 = arith.constant 0 : index
    %c0_8 = arith.constant 0 : index
    %3 = vector.load %arg4[%c0_6, %c0_7, %c0_8] : memref<3x32x32xbf16, #tpu.memory_space<vmem>>, vector<3x32x32xbf16>
    %c0_9 = arith.constant 0 : index
    %c0_10 = arith.constant 0 : index
    %4 = vector.load %arg5[%c0_9, %c0_10] : memref<1x32xf32, #tpu.memory_space<vmem>>, vector<1x32xf32>
    %c0_11 = arith.constant 0 : index
    %c0_12 = arith.constant 0 : index
    %5 = vector.load %arg6[%c0_11, %c0_12] : memref<3x32xbf16, #tpu.memory_space<vmem>>, vector<3x32xbf16>
    %c0_13 = arith.constant 0 : index
    %c0_14 = arith.constant 0 : index
    %6 = vector.load %arg7[%c0_13, %c0_14] : memref<1x32xf32, #tpu.memory_space<vmem>>, vector<1x32xf32>
    %7 = arith.truncf %0 : vector<64x3xf32> to vector<64x3xbf16>
    %cst = arith.constant 0.000000e+00 : bf16
    %8 = vector.broadcast %cst : bf16 to vector<16x3xbf16>
    %9 = vector.extract_strided_slice %7 {offsets = [0, 0], sizes = [48, 3], strides = [1, 1]} : vector<64x3xbf16> to vector<48x3xbf16>
    %10 = tpu.concatenate %8, %9 in 0 : vector<16x3xbf16>, vector<48x3xbf16> -> vector<64x3xbf16>
    %11 = vector.extract_strided_slice %1 {offsets = [0, 0, 0], sizes = [1, 3, 32], strides = [1, 1, 1]} : vector<3x3x32xbf16> to vector<1x3x32xbf16>
    %12 = vector.shape_cast %11 : vector<1x3x32xbf16> to vector<3x32xbf16>
    %cst_15 = arith.constant dense<0.000000e+00> : vector<64x32xf32>
    %13 = tpu.matmul %10, %12, %cst_15 {dimension_numbers = #tpu.dot_dimension_numbers<[1], [0], [0], [1], [0, 0, 1, 1], [], []>} : vector<64x3xbf16>, vector<3x32xbf16>, vector<64x32xf32> -> vector<64x32xf32>
    %cst_16 = arith.constant 0.000000e+00 : bf16
    %14 = vector.broadcast %cst_16 : bf16 to vector<8x3xbf16>
    %15 = vector.extract_strided_slice %7 {offsets = [0, 0], sizes = [56, 3], strides = [1, 1]} : vector<64x3xbf16> to vector<56x3xbf16>
    %16 = tpu.concatenate %14, %15 in 0 : vector<8x3xbf16>, vector<56x3xbf16> -> vector<64x3xbf16>
    %17 = vector.extract_strided_slice %1 {offsets = [1, 0, 0], sizes = [1, 3, 32], strides = [1, 1, 1]} : vector<3x3x32xbf16> to vector<1x3x32xbf16>
    %18 = vector.shape_cast %17 : vector<1x3x32xbf16> to vector<3x32xbf16>
    %cst_17 = arith.constant dense<0.000000e+00> : vector<64x32xf32>
    %19 = tpu.matmul %16, %18, %cst_17 {dimension_numbers = #tpu.dot_dimension_numbers<[1], [0], [0], [1], [0, 0, 1, 1], [], []>} : vector<64x3xbf16>, vector<3x32xbf16>, vector<64x32xf32> -> vector<64x32xf32>
    %20 = arith.addf %13, %19 : vector<64x32xf32>
    %21 = vector.extract_strided_slice %1 {offsets = [2, 0, 0], sizes = [1, 3, 32], strides = [1, 1, 1]} : vector<3x3x32xbf16> to vector<1x3x32xbf16>
    %22 = vector.shape_cast %21 : vector<1x3x32xbf16> to vector<3x32xbf16>
    %cst_18 = arith.constant dense<0.000000e+00> : vector<64x32xf32>
    %23 = tpu.matmul %7, %22, %cst_18 {dimension_numbers = #tpu.dot_dimension_numbers<[1], [0], [0], [1], [0, 0, 1, 1], [], []>} : vector<64x3xbf16>, vector<3x32xbf16>, vector<64x32xf32> -> vector<64x32xf32>
    %24 = arith.addf %20, %23 : vector<64x32xf32>
    %25 = vector.broadcast %2 : vector<1x32xf32> to vector<64x32xf32>
    %26 = arith.addf %24, %25 : vector<64x32xf32>
    %cst_19 = arith.constant 0.000000e+00 : f32
    %27 = vector.broadcast %cst_19 : f32 to vector<64x32xf32>
    %28 = arith.maximumf %26, %27 : vector<64x32xf32>
    %29 = arith.truncf %28 : vector<64x32xf32> to vector<64x32xbf16>
    %cst_20 = arith.constant 0.000000e+00 : bf16
    %30 = vector.broadcast %cst_20 : bf16 to vector<16x32xbf16>
    %31 = vector.extract_strided_slice %29 {offsets = [0, 0], sizes = [48, 32], strides = [1, 1]} : vector<64x32xbf16> to vector<48x32xbf16>
    %32 = tpu.concatenate %30, %31 in 0 : vector<16x32xbf16>, vector<48x32xbf16> -> vector<64x32xbf16>
    %33 = vector.extract_strided_slice %3 {offsets = [0, 0, 0], sizes = [1, 32, 32], strides = [1, 1, 1]} : vector<3x32x32xbf16> to vector<1x32x32xbf16>
    %34 = vector.shape_cast %33 : vector<1x32x32xbf16> to vector<32x32xbf16>
    %cst_21 = arith.constant dense<0.000000e+00> : vector<64x32xf32>
    %35 = tpu.matmul %32, %34, %cst_21 {dimension_numbers = #tpu.dot_dimension_numbers<[1], [0], [0], [1], [0, 0, 1, 1], [], []>} : vector<64x32xbf16>, vector<32x32xbf16>, vector<64x32xf32> -> vector<64x32xf32>
    %cst_22 = arith.constant 0.000000e+00 : bf16
    %36 = vector.broadcast %cst_22 : bf16 to vector<8x32xbf16>
    %37 = vector.extract_strided_slice %29 {offsets = [0, 0], sizes = [56, 32], strides = [1, 1]} : vector<64x32xbf16> to vector<56x32xbf16>
    %38 = tpu.concatenate %36, %37 in 0 : vector<8x32xbf16>, vector<56x32xbf16> -> vector<64x32xbf16>
    %39 = vector.extract_strided_slice %3 {offsets = [1, 0, 0], sizes = [1, 32, 32], strides = [1, 1, 1]} : vector<3x32x32xbf16> to vector<1x32x32xbf16>
    %40 = vector.shape_cast %39 : vector<1x32x32xbf16> to vector<32x32xbf16>
    %cst_23 = arith.constant dense<0.000000e+00> : vector<64x32xf32>
    %41 = tpu.matmul %38, %40, %cst_23 {dimension_numbers = #tpu.dot_dimension_numbers<[1], [0], [0], [1], [0, 0, 1, 1], [], []>} : vector<64x32xbf16>, vector<32x32xbf16>, vector<64x32xf32> -> vector<64x32xf32>
    %42 = arith.addf %35, %41 : vector<64x32xf32>
    %43 = vector.extract_strided_slice %3 {offsets = [2, 0, 0], sizes = [1, 32, 32], strides = [1, 1, 1]} : vector<3x32x32xbf16> to vector<1x32x32xbf16>
    %44 = vector.shape_cast %43 : vector<1x32x32xbf16> to vector<32x32xbf16>
    %cst_24 = arith.constant dense<0.000000e+00> : vector<64x32xf32>
    %45 = tpu.matmul %29, %44, %cst_24 {dimension_numbers = #tpu.dot_dimension_numbers<[1], [0], [0], [1], [0, 0, 1, 1], [], []>} : vector<64x32xbf16>, vector<32x32xbf16>, vector<64x32xf32> -> vector<64x32xf32>
    %46 = arith.addf %42, %45 : vector<64x32xf32>
    %47 = vector.broadcast %4 : vector<1x32xf32> to vector<64x32xf32>
    %48 = arith.addf %46, %47 : vector<64x32xf32>
    %cst_25 = arith.constant 0.000000e+00 : f32
    %49 = vector.broadcast %cst_25 : f32 to vector<64x32xf32>
    %50 = arith.maximumf %48, %49 : vector<64x32xf32>
    %51 = arith.truncf %0 : vector<64x3xf32> to vector<64x3xbf16>
    %cst_26 = arith.constant dense<0.000000e+00> : vector<64x32xf32>
    %52 = tpu.matmul %51, %5, %cst_26 {dimension_numbers = #tpu.dot_dimension_numbers<[1], [0], [0], [1], [0, 0, 1, 1], [], []>} : vector<64x3xbf16>, vector<3x32xbf16>, vector<64x32xf32> -> vector<64x32xf32>
    %53 = vector.broadcast %6 : vector<1x32xf32> to vector<64x32xf32>
    %54 = arith.addf %52, %53 : vector<64x32xf32>
    %55 = arith.addf %50, %54 : vector<64x32xf32>
    %cst_27 = arith.constant 0.000000e+00 : f32
    %56 = vector.broadcast %cst_27 : f32 to vector<64x32xf32>
    %57 = arith.maximumf %55, %56 : vector<64x32xf32>
    %c0_28 = arith.constant 0 : index
    %c0_29 = arith.constant 0 : index
    %c0_30 = arith.constant 0 : index
    %58 = vector.load %arg8[%c0_28, %c0_29, %c0_30] : memref<3x32x32xbf16, #tpu.memory_space<vmem>>, vector<3x32x32xbf16>
    %c0_31 = arith.constant 0 : index
    %c0_32 = arith.constant 0 : index
    %59 = vector.load %arg9[%c0_31, %c0_32] : memref<1x32xf32, #tpu.memory_space<vmem>>, vector<1x32xf32>
    %c0_33 = arith.constant 0 : index
    %c0_34 = arith.constant 0 : index
    %c0_35 = arith.constant 0 : index
    %60 = vector.load %arg10[%c0_33, %c0_34, %c0_35] : memref<3x32x32xbf16, #tpu.memory_space<vmem>>, vector<3x32x32xbf16>
    %c0_36 = arith.constant 0 : index
    %c0_37 = arith.constant 0 : index
    %61 = vector.load %arg11[%c0_36, %c0_37] : memref<1x32xf32, #tpu.memory_space<vmem>>, vector<1x32xf32>
    %62 = arith.truncf %57 : vector<64x32xf32> to vector<64x32xbf16>
    %cst_38 = arith.constant 0.000000e+00 : bf16
    %63 = vector.broadcast %cst_38 : bf16 to vector<32x32xbf16>
    %64 = vector.extract_strided_slice %62 {offsets = [0, 0], sizes = [32, 32], strides = [1, 1]} : vector<64x32xbf16> to vector<32x32xbf16>
    %65 = tpu.concatenate %63, %64 in 0 : vector<32x32xbf16>, vector<32x32xbf16> -> vector<64x32xbf16>
    %66 = vector.extract_strided_slice %58 {offsets = [0, 0, 0], sizes = [1, 32, 32], strides = [1, 1, 1]} : vector<3x32x32xbf16> to vector<1x32x32xbf16>
    %67 = vector.shape_cast %66 : vector<1x32x32xbf16> to vector<32x32xbf16>
    %cst_39 = arith.constant dense<0.000000e+00> : vector<64x32xf32>
    %68 = tpu.matmul %65, %67, %cst_39 {dimension_numbers = #tpu.dot_dimension_numbers<[1], [0], [0], [1], [0, 0, 1, 1], [], []>} : vector<64x32xbf16>, vector<32x32xbf16>, vector<64x32xf32> -> vector<64x32xf32>
    %cst_40 = arith.constant 0.000000e+00 : bf16
    %69 = vector.broadcast %cst_40 : bf16 to vector<16x32xbf16>
    %70 = vector.extract_strided_slice %62 {offsets = [0, 0], sizes = [48, 32], strides = [1, 1]} : vector<64x32xbf16> to vector<48x32xbf16>
    %71 = tpu.concatenate %69, %70 in 0 : vector<16x32xbf16>, vector<48x32xbf16> -> vector<64x32xbf16>
    %72 = vector.extract_strided_slice %58 {offsets = [1, 0, 0], sizes = [1, 32, 32], strides = [1, 1, 1]} : vector<3x32x32xbf16> to vector<1x32x32xbf16>
    %73 = vector.shape_cast %72 : vector<1x32x32xbf16> to vector<32x32xbf16>
    %cst_41 = arith.constant dense<0.000000e+00> : vector<64x32xf32>
    %74 = tpu.matmul %71, %73, %cst_41 {dimension_numbers = #tpu.dot_dimension_numbers<[1], [0], [0], [1], [0, 0, 1, 1], [], []>} : vector<64x32xbf16>, vector<32x32xbf16>, vector<64x32xf32> -> vector<64x32xf32>
    %75 = arith.addf %68, %74 : vector<64x32xf32>
    %76 = vector.extract_strided_slice %58 {offsets = [2, 0, 0], sizes = [1, 32, 32], strides = [1, 1, 1]} : vector<3x32x32xbf16> to vector<1x32x32xbf16>
    %77 = vector.shape_cast %76 : vector<1x32x32xbf16> to vector<32x32xbf16>
    %cst_42 = arith.constant dense<0.000000e+00> : vector<64x32xf32>
    %78 = tpu.matmul %62, %77, %cst_42 {dimension_numbers = #tpu.dot_dimension_numbers<[1], [0], [0], [1], [0, 0, 1, 1], [], []>} : vector<64x32xbf16>, vector<32x32xbf16>, vector<64x32xf32> -> vector<64x32xf32>
    %79 = arith.addf %75, %78 : vector<64x32xf32>
    %80 = vector.broadcast %59 : vector<1x32xf32> to vector<64x32xf32>
    %81 = arith.addf %79, %80 : vector<64x32xf32>
    %cst_43 = arith.constant 0.000000e+00 : f32
    %82 = vector.broadcast %cst_43 : f32 to vector<64x32xf32>
    %83 = arith.maximumf %81, %82 : vector<64x32xf32>
    %84 = arith.truncf %83 : vector<64x32xf32> to vector<64x32xbf16>
    %cst_44 = arith.constant 0.000000e+00 : bf16
    %85 = vector.broadcast %cst_44 : bf16 to vector<32x32xbf16>
    %86 = vector.extract_strided_slice %84 {offsets = [0, 0], sizes = [32, 32], strides = [1, 1]} : vector<64x32xbf16> to vector<32x32xbf16>
    %87 = tpu.concatenate %85, %86 in 0 : vector<32x32xbf16>, vector<32x32xbf16> -> vector<64x32xbf16>
    %88 = vector.extract_strided_slice %60 {offsets = [0, 0, 0], sizes = [1, 32, 32], strides = [1, 1, 1]} : vector<3x32x32xbf16> to vector<1x32x32xbf16>
    %89 = vector.shape_cast %88 : vector<1x32x32xbf16> to vector<32x32xbf16>
    %cst_45 = arith.constant dense<0.000000e+00> : vector<64x32xf32>
    %90 = tpu.matmul %87, %89, %cst_45 {dimension_numbers = #tpu.dot_dimension_numbers<[1], [0], [0], [1], [0, 0, 1, 1], [], []>} : vector<64x32xbf16>, vector<32x32xbf16>, vector<64x32xf32> -> vector<64x32xf32>
    %cst_46 = arith.constant 0.000000e+00 : bf16
    %91 = vector.broadcast %cst_46 : bf16 to vector<16x32xbf16>
    %92 = vector.extract_strided_slice %84 {offsets = [0, 0], sizes = [48, 32], strides = [1, 1]} : vector<64x32xbf16> to vector<48x32xbf16>
    %93 = tpu.concatenate %91, %92 in 0 : vector<16x32xbf16>, vector<48x32xbf16> -> vector<64x32xbf16>
    %94 = vector.extract_strided_slice %60 {offsets = [1, 0, 0], sizes = [1, 32, 32], strides = [1, 1, 1]} : vector<3x32x32xbf16> to vector<1x32x32xbf16>
    %95 = vector.shape_cast %94 : vector<1x32x32xbf16> to vector<32x32xbf16>
    %cst_47 = arith.constant dense<0.000000e+00> : vector<64x32xf32>
    %96 = tpu.matmul %93, %95, %cst_47 {dimension_numbers = #tpu.dot_dimension_numbers<[1], [0], [0], [1], [0, 0, 1, 1], [], []>} : vector<64x32xbf16>, vector<32x32xbf16>, vector<64x32xf32> -> vector<64x32xf32>
    %97 = arith.addf %90, %96 : vector<64x32xf32>
    %98 = vector.extract_strided_slice %60 {offsets = [2, 0, 0], sizes = [1, 32, 32], strides = [1, 1, 1]} : vector<3x32x32xbf16> to vector<1x32x32xbf16>
    %99 = vector.shape_cast %98 : vector<1x32x32xbf16> to vector<32x32xbf16>
    %cst_48 = arith.constant dense<0.000000e+00> : vector<64x32xf32>
    %100 = tpu.matmul %84, %99, %cst_48 {dimension_numbers = #tpu.dot_dimension_numbers<[1], [0], [0], [1], [0, 0, 1, 1], [], []>} : vector<64x32xbf16>, vector<32x32xbf16>, vector<64x32xf32> -> vector<64x32xf32>
    %101 = arith.addf %97, %100 : vector<64x32xf32>
    %102 = vector.broadcast %61 : vector<1x32xf32> to vector<64x32xf32>
    %103 = arith.addf %101, %102 : vector<64x32xf32>
    %cst_49 = arith.constant 0.000000e+00 : f32
    %104 = vector.broadcast %cst_49 : f32 to vector<64x32xf32>
    %105 = arith.maximumf %103, %104 : vector<64x32xf32>
    %106 = arith.addf %105, %57 : vector<64x32xf32>
    %cst_50 = arith.constant 0.000000e+00 : f32
    %107 = vector.broadcast %cst_50 : f32 to vector<64x32xf32>
    %108 = arith.maximumf %106, %107 : vector<64x32xf32>
    %c0_51 = arith.constant 0 : index
    %c0_52 = arith.constant 0 : index
    %109 = vector.load %arg12[%c0_51, %c0_52] : memref<256x32xbf16, #tpu.memory_space<vmem>>, vector<256x32xbf16>
    %c0_53 = arith.constant 0 : index
    %c0_54 = arith.constant 0 : index
    %110 = vector.load %arg13[%c0_53, %c0_54] : memref<1x32xf32, #tpu.memory_space<vmem>>, vector<1x32xf32>
    %111 = vector.extract_strided_slice %108 {offsets = [0, 0], sizes = [8, 32], strides = [1, 1]} : vector<64x32xf32> to vector<8x32xf32>
    %112 = vector.extract_strided_slice %108 {offsets = [8, 0], sizes = [8, 32], strides = [1, 1]} : vector<64x32xf32> to vector<8x32xf32>
    %113 = vector.extract_strided_slice %108 {offsets = [16, 0], sizes = [8, 32], strides = [1, 1]} : vector<64x32xf32> to vector<8x32xf32>
    %114 = vector.extract_strided_slice %108 {offsets = [24, 0], sizes = [8, 32], strides = [1, 1]} : vector<64x32xf32> to vector<8x32xf32>
    %115 = vector.extract_strided_slice %108 {offsets = [32, 0], sizes = [8, 32], strides = [1, 1]} : vector<64x32xf32> to vector<8x32xf32>
    %116 = vector.extract_strided_slice %108 {offsets = [40, 0], sizes = [8, 32], strides = [1, 1]} : vector<64x32xf32> to vector<8x32xf32>
    %117 = vector.extract_strided_slice %108 {offsets = [48, 0], sizes = [8, 32], strides = [1, 1]} : vector<64x32xf32> to vector<8x32xf32>
    %118 = vector.extract_strided_slice %108 {offsets = [56, 0], sizes = [8, 32], strides = [1, 1]} : vector<64x32xf32> to vector<8x32xf32>
    %119 = tpu.concatenate %111, %112, %113, %114, %115, %116, %117, %118 in 1 : vector<8x32xf32>, vector<8x32xf32>, vector<8x32xf32>, vector<8x32xf32>, vector<8x32xf32>, vector<8x32xf32>, vector<8x32xf32>, vector<8x32xf32> -> vector<8x256xf32>
    %120 = arith.truncf %119 : vector<8x256xf32> to vector<8x256xbf16>
    %cst_55 = arith.constant dense<0.000000e+00> : vector<8x32xf32>
    %121 = tpu.matmul %120, %109, %cst_55 {dimension_numbers = #tpu.dot_dimension_numbers<[1], [0], [0], [1], [0, 0, 1, 1], [], []>} : vector<8x256xbf16>, vector<256x32xbf16>, vector<8x32xf32> -> vector<8x32xf32>
    %122 = vector.broadcast %110 : vector<1x32xf32> to vector<8x32xf32>
    %123 = arith.addf %121, %122 : vector<8x32xf32>
    %124 = vector.extract_strided_slice %123 {offsets = [0, 0], sizes = [8, 16], strides = [1, 1]} : vector<8x32xf32> to vector<8x16xf32>
    %125 = vector.extract_strided_slice %123 {offsets = [0, 16], sizes = [8, 16], strides = [1, 1]} : vector<8x32xf32> to vector<8x16xf32>
    %c0_56 = arith.constant 0 : index
    %c0_57 = arith.constant 0 : index
    %126 = vector.load %arg1[%c0_56, %c0_57] : memref<8x16xf32, #tpu.memory_space<vmem>>, vector<8x16xf32>
    %cst_58 = arith.constant 5.000000e-01 : f32
    %127 = vector.broadcast %cst_58 : f32 to vector<8x16xf32>
    %128 = arith.mulf %127, %125 : vector<8x16xf32>
    %129 = math.exp %128 : vector<8x16xf32>
    %130 = arith.mulf %126, %129 : vector<8x16xf32>
    %131 = arith.addf %124, %130 : vector<8x16xf32>
    %132 = vector.shape_cast %131 : vector<8x16xf32> to vector<1x8x16xf32>
    %133 = vector.shape_cast %132 : vector<1x8x16xf32> to vector<1x8x16xf32>
    %134 = vector.broadcast %133 : vector<1x8x16xf32> to vector<8x8x16xf32>
    %135 = vector.shape_cast %134 : vector<8x8x16xf32> to vector<64x16xf32>
    %c0_59 = arith.constant 0 : index
    %c0_60 = arith.constant 0 : index
    %c0_61 = arith.constant 0 : index
    %136 = vector.load %arg14[%c0_59, %c0_60, %c0_61] : memref<3x16x32xbf16, #tpu.memory_space<vmem>>, vector<3x16x32xbf16>
    %c0_62 = arith.constant 0 : index
    %c0_63 = arith.constant 0 : index
    %137 = vector.load %arg15[%c0_62, %c0_63] : memref<1x32xf32, #tpu.memory_space<vmem>>, vector<1x32xf32>
    %c0_64 = arith.constant 0 : index
    %c0_65 = arith.constant 0 : index
    %c0_66 = arith.constant 0 : index
    %138 = vector.load %arg16[%c0_64, %c0_65, %c0_66] : memref<3x32x32xbf16, #tpu.memory_space<vmem>>, vector<3x32x32xbf16>
    %c0_67 = arith.constant 0 : index
    %c0_68 = arith.constant 0 : index
    %139 = vector.load %arg17[%c0_67, %c0_68] : memref<1x32xf32, #tpu.memory_space<vmem>>, vector<1x32xf32>
    %c0_69 = arith.constant 0 : index
    %c0_70 = arith.constant 0 : index
    %140 = vector.load %arg18[%c0_69, %c0_70] : memref<16x32xbf16, #tpu.memory_space<vmem>>, vector<16x32xbf16>
    %c0_71 = arith.constant 0 : index
    %c0_72 = arith.constant 0 : index
    %141 = vector.load %arg19[%c0_71, %c0_72] : memref<1x32xf32, #tpu.memory_space<vmem>>, vector<1x32xf32>
    %142 = arith.truncf %135 : vector<64x16xf32> to vector<64x16xbf16>
    %cst_73 = arith.constant 0.000000e+00 : bf16
    %143 = vector.broadcast %cst_73 : bf16 to vector<16x16xbf16>
    %144 = vector.extract_strided_slice %142 {offsets = [0, 0], sizes = [48, 16], strides = [1, 1]} : vector<64x16xbf16> to vector<48x16xbf16>
    %145 = tpu.concatenate %143, %144 in 0 : vector<16x16xbf16>, vector<48x16xbf16> -> vector<64x16xbf16>
    %146 = vector.extract_strided_slice %136 {offsets = [0, 0, 0], sizes = [1, 16, 32], strides = [1, 1, 1]} : vector<3x16x32xbf16> to vector<1x16x32xbf16>
    %147 = vector.shape_cast %146 : vector<1x16x32xbf16> to vector<16x32xbf16>
    %cst_74 = arith.constant dense<0.000000e+00> : vector<64x32xf32>
    %148 = tpu.matmul %145, %147, %cst_74 {dimension_numbers = #tpu.dot_dimension_numbers<[1], [0], [0], [1], [0, 0, 1, 1], [], []>} : vector<64x16xbf16>, vector<16x32xbf16>, vector<64x32xf32> -> vector<64x32xf32>
    %cst_75 = arith.constant 0.000000e+00 : bf16
    %149 = vector.broadcast %cst_75 : bf16 to vector<8x16xbf16>
    %150 = vector.extract_strided_slice %142 {offsets = [0, 0], sizes = [56, 16], strides = [1, 1]} : vector<64x16xbf16> to vector<56x16xbf16>
    %151 = tpu.concatenate %149, %150 in 0 : vector<8x16xbf16>, vector<56x16xbf16> -> vector<64x16xbf16>
    %152 = vector.extract_strided_slice %136 {offsets = [1, 0, 0], sizes = [1, 16, 32], strides = [1, 1, 1]} : vector<3x16x32xbf16> to vector<1x16x32xbf16>
    %153 = vector.shape_cast %152 : vector<1x16x32xbf16> to vector<16x32xbf16>
    %cst_76 = arith.constant dense<0.000000e+00> : vector<64x32xf32>
    %154 = tpu.matmul %151, %153, %cst_76 {dimension_numbers = #tpu.dot_dimension_numbers<[1], [0], [0], [1], [0, 0, 1, 1], [], []>} : vector<64x16xbf16>, vector<16x32xbf16>, vector<64x32xf32> -> vector<64x32xf32>
    %155 = arith.addf %148, %154 : vector<64x32xf32>
    %156 = vector.extract_strided_slice %136 {offsets = [2, 0, 0], sizes = [1, 16, 32], strides = [1, 1, 1]} : vector<3x16x32xbf16> to vector<1x16x32xbf16>
    %157 = vector.shape_cast %156 : vector<1x16x32xbf16> to vector<16x32xbf16>
    %cst_77 = arith.constant dense<0.000000e+00> : vector<64x32xf32>
    %158 = tpu.matmul %142, %157, %cst_77 {dimension_numbers = #tpu.dot_dimension_numbers<[1], [0], [0], [1], [0, 0, 1, 1], [], []>} : vector<64x16xbf16>, vector<16x32xbf16>, vector<64x32xf32> -> vector<64x32xf32>
    %159 = arith.addf %155, %158 : vector<64x32xf32>
    %160 = vector.broadcast %137 : vector<1x32xf32> to vector<64x32xf32>
    %161 = arith.addf %159, %160 : vector<64x32xf32>
    %cst_78 = arith.constant 0.000000e+00 : f32
    %162 = vector.broadcast %cst_78 : f32 to vector<64x32xf32>
    %163 = arith.maximumf %161, %162 : vector<64x32xf32>
    %164 = arith.truncf %163 : vector<64x32xf32> to vector<64x32xbf16>
    %cst_79 = arith.constant 0.000000e+00 : bf16
    %165 = vector.broadcast %cst_79 : bf16 to vector<16x32xbf16>
    %166 = vector.extract_strided_slice %164 {offsets = [0, 0], sizes = [48, 32], strides = [1, 1]} : vector<64x32xbf16> to vector<48x32xbf16>
    %167 = tpu.concatenate %165, %166 in 0 : vector<16x32xbf16>, vector<48x32xbf16> -> vector<64x32xbf16>
    %168 = vector.extract_strided_slice %138 {offsets = [0, 0, 0], sizes = [1, 32, 32], strides = [1, 1, 1]} : vector<3x32x32xbf16> to vector<1x32x32xbf16>
    %169 = vector.shape_cast %168 : vector<1x32x32xbf16> to vector<32x32xbf16>
    %cst_80 = arith.constant dense<0.000000e+00> : vector<64x32xf32>
    %170 = tpu.matmul %167, %169, %cst_80 {dimension_numbers = #tpu.dot_dimension_numbers<[1], [0], [0], [1], [0, 0, 1, 1], [], []>} : vector<64x32xbf16>, vector<32x32xbf16>, vector<64x32xf32> -> vector<64x32xf32>
    %cst_81 = arith.constant 0.000000e+00 : bf16
    %171 = vector.broadcast %cst_81 : bf16 to vector<8x32xbf16>
    %172 = vector.extract_strided_slice %164 {offsets = [0, 0], sizes = [56, 32], strides = [1, 1]} : vector<64x32xbf16> to vector<56x32xbf16>
    %173 = tpu.concatenate %171, %172 in 0 : vector<8x32xbf16>, vector<56x32xbf16> -> vector<64x32xbf16>
    %174 = vector.extract_strided_slice %138 {offsets = [1, 0, 0], sizes = [1, 32, 32], strides = [1, 1, 1]} : vector<3x32x32xbf16> to vector<1x32x32xbf16>
    %175 = vector.shape_cast %174 : vector<1x32x32xbf16> to vector<32x32xbf16>
    %cst_82 = arith.constant dense<0.000000e+00> : vector<64x32xf32>
    %176 = tpu.matmul %173, %175, %cst_82 {dimension_numbers = #tpu.dot_dimension_numbers<[1], [0], [0], [1], [0, 0, 1, 1], [], []>} : vector<64x32xbf16>, vector<32x32xbf16>, vector<64x32xf32> -> vector<64x32xf32>
    %177 = arith.addf %170, %176 : vector<64x32xf32>
    %178 = vector.extract_strided_slice %138 {offsets = [2, 0, 0], sizes = [1, 32, 32], strides = [1, 1, 1]} : vector<3x32x32xbf16> to vector<1x32x32xbf16>
    %179 = vector.shape_cast %178 : vector<1x32x32xbf16> to vector<32x32xbf16>
    %cst_83 = arith.constant dense<0.000000e+00> : vector<64x32xf32>
    %180 = tpu.matmul %164, %179, %cst_83 {dimension_numbers = #tpu.dot_dimension_numbers<[1], [0], [0], [1], [0, 0, 1, 1], [], []>} : vector<64x32xbf16>, vector<32x32xbf16>, vector<64x32xf32> -> vector<64x32xf32>
    %181 = arith.addf %177, %180 : vector<64x32xf32>
    %182 = vector.broadcast %139 : vector<1x32xf32> to vector<64x32xf32>
    %183 = arith.addf %181, %182 : vector<64x32xf32>
    %cst_84 = arith.constant 0.000000e+00 : f32
    %184 = vector.broadcast %cst_84 : f32 to vector<64x32xf32>
    %185 = arith.maximumf %183, %184 : vector<64x32xf32>
    %186 = arith.truncf %135 : vector<64x16xf32> to vector<64x16xbf16>
    %cst_85 = arith.constant dense<0.000000e+00> : vector<64x32xf32>
    %187 = tpu.matmul %186, %140, %cst_85 {dimension_numbers = #tpu.dot_dimension_numbers<[1], [0], [0], [1], [0, 0, 1, 1], [], []>} : vector<64x16xbf16>, vector<16x32xbf16>, vector<64x32xf32> -> vector<64x32xf32>
    %188 = vector.broadcast %141 : vector<1x32xf32> to vector<64x32xf32>
    %189 = arith.addf %187, %188 : vector<64x32xf32>
    %190 = arith.addf %185, %189 : vector<64x32xf32>
    %cst_86 = arith.constant 0.000000e+00 : f32
    %191 = vector.broadcast %cst_86 : f32 to vector<64x32xf32>
    %192 = arith.maximumf %190, %191 : vector<64x32xf32>
    %c0_87 = arith.constant 0 : index
    %c0_88 = arith.constant 0 : index
    %c0_89 = arith.constant 0 : index
    %193 = vector.load %arg20[%c0_87, %c0_88, %c0_89] : memref<3x32x32xbf16, #tpu.memory_space<vmem>>, vector<3x32x32xbf16>
    %c0_90 = arith.constant 0 : index
    %c0_91 = arith.constant 0 : index
    %194 = vector.load %arg21[%c0_90, %c0_91] : memref<1x32xf32, #tpu.memory_space<vmem>>, vector<1x32xf32>
    %c0_92 = arith.constant 0 : index
    %c0_93 = arith.constant 0 : index
    %c0_94 = arith.constant 0 : index
    %195 = vector.load %arg22[%c0_92, %c0_93, %c0_94] : memref<3x32x32xbf16, #tpu.memory_space<vmem>>, vector<3x32x32xbf16>
    %c0_95 = arith.constant 0 : index
    %c0_96 = arith.constant 0 : index
    %196 = vector.load %arg23[%c0_95, %c0_96] : memref<1x32xf32, #tpu.memory_space<vmem>>, vector<1x32xf32>
    %197 = arith.truncf %192 : vector<64x32xf32> to vector<64x32xbf16>
    %cst_97 = arith.constant 0.000000e+00 : bf16
    %198 = vector.broadcast %cst_97 : bf16 to vector<32x32xbf16>
    %199 = vector.extract_strided_slice %197 {offsets = [0, 0], sizes = [32, 32], strides = [1, 1]} : vector<64x32xbf16> to vector<32x32xbf16>
    %200 = tpu.concatenate %198, %199 in 0 : vector<32x32xbf16>, vector<32x32xbf16> -> vector<64x32xbf16>
    %201 = vector.extract_strided_slice %193 {offsets = [0, 0, 0], sizes = [1, 32, 32], strides = [1, 1, 1]} : vector<3x32x32xbf16> to vector<1x32x32xbf16>
    %202 = vector.shape_cast %201 : vector<1x32x32xbf16> to vector<32x32xbf16>
    %cst_98 = arith.constant dense<0.000000e+00> : vector<64x32xf32>
    %203 = tpu.matmul %200, %202, %cst_98 {dimension_numbers = #tpu.dot_dimension_numbers<[1], [0], [0], [1], [0, 0, 1, 1], [], []>} : vector<64x32xbf16>, vector<32x32xbf16>, vector<64x32xf32> -> vector<64x32xf32>
    %cst_99 = arith.constant 0.000000e+00 : bf16
    %204 = vector.broadcast %cst_99 : bf16 to vector<16x32xbf16>
    %205 = vector.extract_strided_slice %197 {offsets = [0, 0], sizes = [48, 32], strides = [1, 1]} : vector<64x32xbf16> to vector<48x32xbf16>
    %206 = tpu.concatenate %204, %205 in 0 : vector<16x32xbf16>, vector<48x32xbf16> -> vector<64x32xbf16>
    %207 = vector.extract_strided_slice %193 {offsets = [1, 0, 0], sizes = [1, 32, 32], strides = [1, 1, 1]} : vector<3x32x32xbf16> to vector<1x32x32xbf16>
    %208 = vector.shape_cast %207 : vector<1x32x32xbf16> to vector<32x32xbf16>
    %cst_100 = arith.constant dense<0.000000e+00> : vector<64x32xf32>
    %209 = tpu.matmul %206, %208, %cst_100 {dimension_numbers = #tpu.dot_dimension_numbers<[1], [0], [0], [1], [0, 0, 1, 1], [], []>} : vector<64x32xbf16>, vector<32x32xbf16>, vector<64x32xf32> -> vector<64x32xf32>
    %210 = arith.addf %203, %209 : vector<64x32xf32>
    %211 = vector.extract_strided_slice %193 {offsets = [2, 0, 0], sizes = [1, 32, 32], strides = [1, 1, 1]} : vector<3x32x32xbf16> to vector<1x32x32xbf16>
    %212 = vector.shape_cast %211 : vector<1x32x32xbf16> to vector<32x32xbf16>
    %cst_101 = arith.constant dense<0.000000e+00> : vector<64x32xf32>
    %213 = tpu.matmul %197, %212, %cst_101 {dimension_numbers = #tpu.dot_dimension_numbers<[1], [0], [0], [1], [0, 0, 1, 1], [], []>} : vector<64x32xbf16>, vector<32x32xbf16>, vector<64x32xf32> -> vector<64x32xf32>
    %214 = arith.addf %210, %213 : vector<64x32xf32>
    %215 = vector.broadcast %194 : vector<1x32xf32> to vector<64x32xf32>
    %216 = arith.addf %214, %215 : vector<64x32xf32>
    %cst_102 = arith.constant 0.000000e+00 : f32
    %217 = vector.broadcast %cst_102 : f32 to vector<64x32xf32>
    %218 = arith.maximumf %216, %217 : vector<64x32xf32>
    %219 = arith.truncf %218 : vector<64x32xf32> to vector<64x32xbf16>
    %cst_103 = arith.constant 0.000000e+00 : bf16
    %220 = vector.broadcast %cst_103 : bf16 to vector<32x32xbf16>
    %221 = vector.extract_strided_slice %219 {offsets = [0, 0], sizes = [32, 32], strides = [1, 1]} : vector<64x32xbf16> to vector<32x32xbf16>
    %222 = tpu.concatenate %220, %221 in 0 : vector<32x32xbf16>, vector<32x32xbf16> -> vector<64x32xbf16>
    %223 = vector.extract_strided_slice %195 {offsets = [0, 0, 0], sizes = [1, 32, 32], strides = [1, 1, 1]} : vector<3x32x32xbf16> to vector<1x32x32xbf16>
    %224 = vector.shape_cast %223 : vector<1x32x32xbf16> to vector<32x32xbf16>
    %cst_104 = arith.constant dense<0.000000e+00> : vector<64x32xf32>
    %225 = tpu.matmul %222, %224, %cst_104 {dimension_numbers = #tpu.dot_dimension_numbers<[1], [0], [0], [1], [0, 0, 1, 1], [], []>} : vector<64x32xbf16>, vector<32x32xbf16>, vector<64x32xf32> -> vector<64x32xf32>
    %cst_105 = arith.constant 0.000000e+00 : bf16
    %226 = vector.broadcast %cst_105 : bf16 to vector<16x32xbf16>
    %227 = vector.extract_strided_slice %219 {offsets = [0, 0], sizes = [48, 32], strides = [1, 1]} : vector<64x32xbf16> to vector<48x32xbf16>
    %228 = tpu.concatenate %226, %227 in 0 : vector<16x32xbf16>, vector<48x32xbf16> -> vector<64x32xbf16>
    %229 = vector.extract_strided_slice %195 {offsets = [1, 0, 0], sizes = [1, 32, 32], strides = [1, 1, 1]} : vector<3x32x32xbf16> to vector<1x32x32xbf16>
    %230 = vector.shape_cast %229 : vector<1x32x32xbf16> to vector<32x32xbf16>
    %cst_106 = arith.constant dense<0.000000e+00> : vector<64x32xf32>
    %231 = tpu.matmul %228, %230, %cst_106 {dimension_numbers = #tpu.dot_dimension_numbers<[1], [0], [0], [1], [0, 0, 1, 1], [], []>} : vector<64x32xbf16>, vector<32x32xbf16>, vector<64x32xf32> -> vector<64x32xf32>
    %232 = arith.addf %225, %231 : vector<64x32xf32>
    %233 = vector.extract_strided_slice %195 {offsets = [2, 0, 0], sizes = [1, 32, 32], strides = [1, 1, 1]} : vector<3x32x32xbf16> to vector<1x32x32xbf16>
    %234 = vector.shape_cast %233 : vector<1x32x32xbf16> to vector<32x32xbf16>
    %cst_107 = arith.constant dense<0.000000e+00> : vector<64x32xf32>
    %235 = tpu.matmul %219, %234, %cst_107 {dimension_numbers = #tpu.dot_dimension_numbers<[1], [0], [0], [1], [0, 0, 1, 1], [], []>} : vector<64x32xbf16>, vector<32x32xbf16>, vector<64x32xf32> -> vector<64x32xf32>
    %236 = arith.addf %232, %235 : vector<64x32xf32>
    %237 = vector.broadcast %196 : vector<1x32xf32> to vector<64x32xf32>
    %238 = arith.addf %236, %237 : vector<64x32xf32>
    %cst_108 = arith.constant 0.000000e+00 : f32
    %239 = vector.broadcast %cst_108 : f32 to vector<64x32xf32>
    %240 = arith.maximumf %238, %239 : vector<64x32xf32>
    %241 = arith.addf %240, %192 : vector<64x32xf32>
    %cst_109 = arith.constant 0.000000e+00 : f32
    %242 = vector.broadcast %cst_109 : f32 to vector<64x32xf32>
    %243 = arith.maximumf %241, %242 : vector<64x32xf32>
    %c0_110 = arith.constant 0 : index
    %c0_111 = arith.constant 0 : index
    %244 = vector.load %arg24[%c0_110, %c0_111] : memref<32x128xbf16, #tpu.memory_space<vmem>>, vector<32x128xbf16>
    %c0_112 = arith.constant 0 : index
    %c0_113 = arith.constant 0 : index
    %245 = vector.load %arg25[%c0_112, %c0_113] : memref<1x128xf32, #tpu.memory_space<vmem>>, vector<1x128xf32>
    %246 = arith.truncf %243 : vector<64x32xf32> to vector<64x32xbf16>
    %cst_114 = arith.constant dense<0.000000e+00> : vector<64x128xf32>
    %247 = tpu.matmul %246, %244, %cst_114 {dimension_numbers = #tpu.dot_dimension_numbers<[1], [0], [0], [1], [0, 0, 1, 1], [], []>} : vector<64x32xbf16>, vector<32x128xbf16>, vector<64x128xf32> -> vector<64x128xf32>
    %248 = vector.broadcast %245 : vector<1x128xf32> to vector<64x128xf32>
    %249 = arith.addf %247, %248 : vector<64x128xf32>
    %cst_115 = arith.constant 5.000000e-01 : f32
    %250 = vector.broadcast %cst_115 : f32 to vector<64x128xf32>
    %251 = arith.mulf %250, %249 : vector<64x128xf32>
    %252 = math.tanh %251 : vector<64x128xf32>
    %cst_116 = arith.constant 1.000000e+00 : f32
    %253 = vector.broadcast %cst_116 : f32 to vector<64x128xf32>
    %254 = arith.addf %252, %253 : vector<64x128xf32>
    %cst_117 = arith.constant 5.000000e-01 : f32
    %255 = vector.broadcast %cst_117 : f32 to vector<64x128xf32>
    %256 = arith.mulf %255, %254 : vector<64x128xf32>
    %c0_118 = arith.constant 0 : index
    %c0_119 = arith.constant 0 : index
    %257 = vector.load %arg27[%c0_118, %c0_119] : memref<64x128xf32, #tpu.memory_space<vmem>>, vector<64x128xf32>
    tpu.vector_store %arg27[%c0_118, %c0_119], %256 {strides = array<i32>} : memref<64x128xf32, #tpu.memory_space<vmem>>, vector<64x128xf32>,
    %cst_120 = arith.constant 0.000000e+00 : f32
    %258 = vector.broadcast %cst_120 : f32 to vector<8x80xf32>
    %259 = tpu.concatenate %124, %125, %131, %258 in 1 : vector<8x16xf32>, vector<8x16xf32>, vector<8x16xf32>, vector<8x80xf32> -> vector<8x128xf32>
    %c0_121 = arith.constant 0 : index
    %c0_122 = arith.constant 0 : index
    %260 = vector.load %arg26[%c0_121, %c0_122] : memref<8x128xf32, #tpu.memory_space<vmem>>, vector<8x128xf32>
    tpu.vector_store %arg26[%c0_121, %c0_122], %259 {strides = array<i32>} : memref<8x128xf32, #tpu.memory_space<vmem>>, vector<8x128xf32>,
    return
  }
}

</mosaic_0001>

<bundles_post_ra>
// kernel: vae_tcn_forward.1
= control target key start
LH: loop header
LB: loop body
LE: loop exit
PB: predicated region body
PF: predicated region fallthrough
CT: control target
= control target key end

     0   :  { %s3722_s0 = inlined_call_operand.vmem [shape: f32[64,3], index: 0, kind: input, shape index: {}]   ;;  %s3723_s1 = inlined_call_operand.vmem [shape: f32[8,16], index: 1, kind: input, shape index: {}]   ;;  %s3724_s2 = inlined_call_operand.vmem [shape: bf16[3,3,32], index: 2, kind: input, shape index: {}]   ;;  %s3725_s3 = inlined_call_operand.vmem [shape: f32[1,32], index: 3, kind: input, shape index: {}]   ;;  %s3726_s4 = inlined_call_operand.vmem [shape: bf16[3,32,32], index: 4, kind: input, shape index: {}]   ;;  %s3727_s5 = inlined_call_operand.vmem [shape: f32[1,32], index: 5, kind: input, shape index: {}]   ;;  %s3728_s6 = inlined_call_operand.vmem [shape: bf16[3,32], index: 6, kind: input, shape index: {}]   ;;  %s3729_s7 = inlined_call_operand.vmem [shape: f32[1,32], index: 7, kind: input, shape index: {}]   ;;  %s3730_s8 = inlined_call_operand.vmem [shape: bf16[3,32,32], index: 8, kind: input, shape index: {}]   ;;  %s3731_s9 = inlined_call_operand.vmem [shape: f32[1,32], index: 9, kind: input, shape index: {}]   ;;  %s3732_s10 = inlined_call_operand.vmem [shape: bf16[3,32,32], index: 10, kind: input, shape index: {}]   ;;  %s3733_s11 = inlined_call_operand.vmem [shape: f32[1,32], index: 11, kind: input, shape index: {}]   ;;  %s3734_s12 = inlined_call_operand.vmem [shape: bf16[256,32], index: 12, kind: input, shape index: {}]   ;;  %s3735_s13 = inlined_call_operand.hbm [shape: f32[1,32], index: 13, kind: input, shape index: {}]   ;;  %s3736_s14 = inlined_call_operand.hbm [shape: bf16[3,16,32], index: 14, kind: input, shape index: {}]   ;;  %s3737_s15 = inlined_call_operand.hbm [shape: f32[1,32], index: 15, kind: input, shape index: {}]   ;;  %s3738_s16 = inlined_call_operand.vmem [shape: bf16[3,32,32], index: 16, kind: input, shape index: {}]   ;;  %s3739_s17 = inlined_call_operand.hbm [shape: f32[1,32], index: 17, kind: input, shape index: {}]   ;;  %s3740_s18 = inlined_call_operand.vmem [shape: bf16[16,32], index: 18, kind: input, shape index: {}]   ;;  %s3741_s19 = inlined_call_operand.hbm [shape: f32[1,32], index: 19, kind: input, shape index: {}]   ;;  %s3742_s20 = inlined_call_operand.vmem [shape: bf16[3,32,32], index: 20, kind: input, shape index: {}]   ;;  %s3743_s21 = inlined_call_operand.hbm [shape: f32[1,32], index: 21, kind: input, shape index: {}]   ;;  %s3744_s22 = inlined_call_operand.hbm [shape: bf16[3,32,32], index: 22, kind: input, shape index: {}]   ;;  %s3745_s23 = inlined_call_operand.hbm [shape: f32[1,32], index: 23, kind: input, shape index: {}]   ;;  %s3746_s24 = inlined_call_operand.hbm [shape: bf16[32,128], index: 24, kind: input, shape index: {}]   ;;  %s3747_s25 = inlined_call_operand.hbm [shape: f32[1,128], index: 25, kind: input, shape index: {}]   ;;  %s3748_s26 = inlined_call_operand.vmem [shape: f32[8,128], index: 26, kind: output, shape index: {0}]   ;;  %s3749_s27 = inlined_call_operand.vmem [shape: f32[64,128], index: 27, kind: output, shape index: {1}]  }
   0x1   :  { %3755 = sst [smem:[#allocation24_spill]] %s3722_s0 }
   0x2   :  { %3756 = sst [smem:[#allocation25_spill]] %s3723_s1 }
   0x3   :  { %3757 = sst [smem:[#allocation26_spill]] %s3724_s2 }
   0x4   :  { %3758 = sst [smem:[#allocation27_spill]] %s3725_s3 }
   0x5   :  { %3759 = sst [smem:[#allocation28_spill]] %s3726_s4 }
   0x6   :  { %3760 = sst [smem:[#allocation29_spill]] %s3727_s5 }
   0x7   :  { %3761 = sst [smem:[#allocation30_spill]] %s3728_s6 }
   0x8   :  { %3762 = sst [smem:[#allocation31_spill]] %s3729_s7 }
   0x9   :  { %3763 = sst [smem:[#allocation32_spill]] %s3730_s8 }
   0xa   :  { %3764 = sst [smem:[#allocation33_spill]] %s3731_s9 }
   0xb   :  { %3765 = sst [smem:[#allocation34_spill]] %s3732_s10 }
   0xc   :  { %3766 = sst [smem:[#allocation35_spill]] %s3733_s11 }
   0xd   :  { %33 = vsyncpa [#allocation3], 0 }
   0xe   :  { %34 = vsyncpa [#allocation5], 0 }
   0xf   :  { %35 = vsyncpa [#allocation8], 0 }
  0x10   :  { %36 = vsyncpa [#allocation11], 0 }
  0x11   :  { %37 = vsyncpa [#allocation14], 0  ;;  %s80_s8 = sshll.u32 %s3736_s14, 4  ;;  %s81_s8 = int_to_ptr.hbm [resolvable:$true] %s80_s8 }
  0x12   :  { %38 = vsyncpa [#allocation17], 0  ;;  %s3000_s30 = smov [#allocation4]   ;;  %s107_s0 = sshll.u32 %s3739_s17, 4  ;;  %s108_s0 = int_to_ptr.hbm [resolvable:$true] %s107_s0 }
  0x13   :  { %s82_s9 = sshll.u32 %s3000_s30, 4  ;;  %s3001_s10 = smov 64   ;;  %s83_s9 = int_to_ptr.vmem [resolvable:$true] %s82_s9 }
  0x14   :  { %s3002_s29 = smov 4   ;;  %s3003_s1 = smov [#allocation7]  }
  0x15   :  { %88 = dma.hbm_to_vmem [thread:$0]  %s81_s8, 384, %s83_s9, [#allocation5], %s3001_s10, %s3001_s10, %s3002_s29  }
  0x16   :  { %s109_s6 = sshll.u32 %s3003_s1, 4  ;;  %s133_s2 = sshll.u32 %s3743_s21, 4  ;;  %s110_s6 = int_to_ptr.vmem [resolvable:$true] %s109_s6  ;;  %s134_s2 = int_to_ptr.hbm [resolvable:$true] %s133_s2 }
  0x17   :  { %112 = dma.hbm_to_vmem [thread:$0]  %s108_s0, 16, %s110_s6, [#allocation8]  }
  0x18   :  { %s157_s17 = sshll.u32 %s3745_s23, 4  ;;  %s3004_s4 = smov [#allocation10]   ;;  %s158_s17 = int_to_ptr.hbm [resolvable:$true] %s157_s17 }
  0x19   :  { %s135_s30 = sshll.u32 %s3004_s4, 4  ;;  %s3005_s8 = smov [#allocation13]   ;;  %s136_s30 = int_to_ptr.vmem [resolvable:$true] %s135_s30 }
  0x1a   :  { %138 = dma.hbm_to_vmem [thread:$0]  %s134_s2, 16, %s136_s30, [#allocation11]  }
  0x1b   :  { %s159_s9 = sshll.u32 %s3005_s8, 4  ;;  %s70_s1 = sshll.u32 %s3735_s13, 4  ;;  %s160_s9 = int_to_ptr.vmem [resolvable:$true] %s159_s9  ;;  %s71_s1 = int_to_ptr.hbm [resolvable:$true] %s70_s1 }
  0x1c   :  { %162 = dma.hbm_to_vmem [thread:$0]  %s158_s17, 16, %s160_s9, [#allocation14]  }
  0x1d   :  { %s94_s6 = sshll.u32 %s3737_s15, 4  ;;  %s3006_s11 = smov [#allocation2]   ;;  %s95_s6 = int_to_ptr.hbm [resolvable:$true] %s94_s6 }
  0x1e   :  { %s72_s23 = sshll.u32 %s3006_s11, 4  ;;  %s3007_s14 = smov [#allocation6]   ;;  %s73_s23 = int_to_ptr.vmem [resolvable:$true] %s72_s23 }
  0x1f   :  { %75 = dma.hbm_to_vmem [thread:$0]  %s71_s1, 16, %s73_s23, [#allocation3]  }
  0x20   :  { %s96_s2 = sshll.u32 %s3007_s14, 4  ;;  %s120_s4 = sshll.u32 %s3741_s19, 4  ;;  %s97_s2 = int_to_ptr.vmem [resolvable:$true] %s96_s2  ;;  %s121_s4 = int_to_ptr.hbm [resolvable:$true] %s120_s4 }
  0x21   :  { %99 = dma.hbm_to_vmem [thread:$0]  %s95_s6, 16, %s97_s2, [#allocation5]  }
  0x22   :  { %s143_s30 = sshll.u32 %s3744_s22, 4  ;;  %s3008_s8 = smov [#allocation9]   ;;  %s144_s30 = int_to_ptr.hbm [resolvable:$true] %s143_s30 }
  0x23   :  { %s122_s15 = sshll.u32 %s3008_s8, 4  ;;  %s3009_s9 = smov [#allocation12]   ;;  %s123_s15 = int_to_ptr.vmem [resolvable:$true] %s122_s15 }
  0x24   :  { %125 = dma.hbm_to_vmem [thread:$0]  %s121_s4, 16, %s123_s15, [#allocation8]  }
  0x25   :  { %s145_s5 = sshll.u32 %s3009_s9, 4  ;;  %s167_s21 = sshll.u32 %s3746_s24, 4  ;;  %s146_s5 = int_to_ptr.vmem [resolvable:$true] %s145_s5  ;;  %s168_s21 = int_to_ptr.hbm [resolvable:$true] %s167_s21 }
  0x26   :  { %151 = dma.hbm_to_vmem [thread:$0]  %s144_s30, 768, %s146_s5, [#allocation11], %s3001_s10, %s3001_s10, %s3002_s29  }
  0x27   :  { %s181_s22 = sshll.u32 %s3747_s25, 4  ;;  %s3010_s6 = smov [#allocation15]   ;;  %s182_s22 = int_to_ptr.hbm [resolvable:$true] %s181_s22 }
  0x28   :  { %s169_s11 = sshll.u32 %s3010_s6, 4  ;;  %s3011_s23 = smov [#allocation16]   ;;  %s170_s11 = int_to_ptr.vmem [resolvable:$true] %s169_s11 }
  0x29   :  { %175 = dma.hbm_to_vmem [thread:$0]  %s168_s21, 256, %s170_s11, [#allocation14], %s3001_s10, %s3001_s10, %s3002_s29  }
  0x2a   :  { %s183_s24 = sshll.u32 %s3011_s23, 4  ;;  %s184_s24 = int_to_ptr.vmem [resolvable:$true] %s183_s24 }
  0x2b   :  { %186 = dma.hbm_to_vmem [thread:$0]  %s182_s22, 16, %s184_s24, [#allocation17]  }
  0x2c   :  { %2988 = dma.done.wait [#allocation3], 16  }
  0x2d   :  { %2989 = vsyncadd [#allocation3], 4294967280 }
  0x2e   :  { %2990 = dma.done.wait [#allocation5], 400  }
  0x2f   :  { %2991 = vsyncadd [#allocation5], 4294966896 }
  0x30   :  { %2992 = dma.done.wait [#allocation8], 32  }
  0x31   :  { %2993 = vsyncadd [#allocation8], 4294967264 }
  0x32   :  { %2994 = dma.done.wait [#allocation11], 784  }
  0x33   :  { %2995 = vsyncadd [#allocation11], 4294966512 }
  0x34   :  { %2996 = dma.done.wait [#allocation14], 272  }
  0x35   :  { %2997 = vsyncadd [#allocation14], 4294967024 }
  0x36   :  { %2998 = dma.done.wait [#allocation17], 16  }
  0x37   :  { %2999 = vsyncadd [#allocation17], 4294967280  ;;  %vm300_vm0 = vcmask 1040384   ;;  %vm301_vm1 = vcmask 1041408   ;;  %v3012_v0 = vmov 65535   ;;  %s3767_s14 = sld [smem:[#allocation26_spill]] }
  0x38   :  { %v302_v1 = vsel %vm300_vm0, 4294967295, %v3012_v0  ;;  %s3768_s30 = sld [smem:[#allocation24_spill]]  ;;  %vm288_vm2 = vcmask 23552   ;;  %vm284_vm3 = vcmask 1043456   ;;  %v3013_v15 = vmov 0   ;;  %s3014_s22 = smov 32  }
  0x39   :  { %v303_v2 = vsel %vm301_vm1, %v302_v1, 0  ;;  %s3769_s23 = sld [smem:[#allocation28_spill]]  ;;  %vm487_vm4 = vcmask 261120   ;;  %vm1185_vm5 = vcmask 523264   ;;  %vm1187_vm6 = vcmask 785408  }
  0x3a   :  { %s3770_s29 = sld [smem:[#allocation30_spill]]  ;;  %vm1364_vm7 = vcmask 130048   ;;  %vm2290_vm8 = vcmask 392192  }
  0x3b   :  { %s3771_s0 = sld [smem:[#allocation27_spill]] }
  0x3c   :  { %s3772_s11 = sld [smem:[#allocation32_spill]] }
  0x3d   :  { %v236_v3 = vld [vmem:[%s3767_s14] sm:$0x3]  ;;  %v238_v4 = vld [vmem:[%s3767_s14 + $0x4] sm:$0x3]  ;;  %v237_v5 = vld [vmem:[%s3767_s14 + $0x2] sm:$0x3] }
  0x3e   :  { %v348_v6 = vand.u32 %v303_v2, %v236_v3  ;;  %v386_v7 = vand.u32 %v303_v2, %v238_v4  ;;  %v305_v8 = vand.u32 %v303_v2, %v237_v5  ;;  %v228_v9 = vld [vmem:[%s3768_s30] sm:$0xff]  ;;  %v229_v10 = vld [vmem:[%s3768_s30 + $0x8] sm:$0xff]  ;;  %v230_v19 = vld [vmem:[%s3768_s30 + $0x10] sm:$0xff]  ;;  %s3773_s15 = sld [smem:[#allocation29_spill]]  ;;  %s3015_s14 = smov 96  }
  0x3f   :  { %v255_v11 = vpack.c.bf16 %v228_v9, %v228_v9  ;;  %v256_v12 = vpack.c.bf16 %v229_v10, %v229_v10  ;;  %v231_v20 = vld [vmem:[%s3768_s30 + $0x18] sm:$0xff]  ;;  %v257_v21 = vpack.c.bf16 %v230_v19, %v230_v19  ;;  %v232_v27 = vld [vmem:[%s3768_s30 + $0x20] sm:$0xff]  ;;  %v233_v28 = vld [vmem:[%s3768_s30 + $0x28] sm:$0xff]  ;;  %s3774_s5 = sld [smem:[#allocation31_spill]] }
  0x40   :  { %357 = vmatpush.bf16.msra.mxu1 %v348_v6  ;;  %395 = vmatpush.bf16.msra.mxu2 %v386_v7  ;;  %v258_v22 = vpack.c.bf16 %v231_v20, %v231_v20  ;;  %v2632_v29 = vld [vmem:[%s3769_s23 + $0x8] sm:$0xff]  ;;  %v253_v30 = vld [vmem:[%s3770_s29] sm:$0x3]  ;;  %v259_v35 = vpack.c.bf16 %v232_v27, %v232_v27  ;;  %v260_v36 = vpack.c.bf16 %v233_v28, %v233_v28  ;;  %v234_v41 = vld [vmem:[%s3768_s30 + $0x30] sm:$0xff]  ;;  %s3775_s21 = sld [smem:[#allocation34_spill]] }
  0x41   :  { %314 = vmatpush.bf16.msra.mxu0 %v305_v8  ;;  %v269_v13 = vunpack.c.l.b16 %v255_v11  ;;  %v270_v14 = vunpack.c.l.b16 %v256_v12  ;;  %v271_v23 = vunpack.c.l.b16 %v257_v21  ;;  %v2636_v31 = vld [vmem:[%s3769_s23 + $0x28] sm:$0xff]  ;;  %v658_v32 = vand.u32 %v303_v2, %v253_v30  ;;  %v2631_v33 = vld [vmem:[%s3769_s23] sm:$0xff]  ;;  %v235_v42 = vld [vmem:[%s3768_s30 + $0x38] sm:$0xff]  ;;  %s3776_s7 = sld [smem:[#allocation33_spill]] }
  0x42   :  { %v272_v24 = vunpack.c.l.b16 %v258_v22  ;;  %v2635_v34 = vld [vmem:[%s3769_s23 + $0x20] sm:$0xff]  ;;  %v273_v37 = vunpack.c.l.b16 %v259_v35  ;;  %v274_v38 = vunpack.c.l.b16 %v260_v36  ;;  %v261_v43 = vpack.c.bf16 %v234_v41, %v234_v41  ;;  %v2634_v49 = vld [vmem:[%s3769_s23 + $0x18] sm:$0xff]  ;;  %v2633_v50 = vld [vmem:[%s3769_s23 + $0x10] sm:$0xff]  ;;  %s3777_s17 = sld [smem:[#allocation35_spill]] }
  0x43   :  { %358 = vmatmul.bf16.vlgmr.msra.gmra.mxu1 %v3013_v15  ;;  %v275_v16 = vpack.c.b16 %v270_v14, %v269_v13  ;;  %v280_v17 = vpack.c.b16 %v269_v13, %v269_v13  ;;  %v281_v26 = vpack.c.b16 %v271_v23, %v270_v14  ;;  %v262_v44 = vpack.c.bf16 %v235_v42, %v235_v42  ;;  %v3271_v54 = vld [vmem:[%s3771_s0] ss:$0 sm:$0xff]  ;;  %v2642_v41 = vld [vmem:[%s3772_s11 + $0x28] sm:$0xff] }
  0x44   :  { %v276_v25 = vpack.c.b16 %v272_v24, %v271_v23  ;;  %604 = vmatpush.bf16.msrb.mxu1 %v2636_v31  ;;  %667 = vmatpush.bf16.msrb.mxu2 %v658_v32  ;;  %v277_v39 = vpack.c.b16 %v274_v38, %v273_v37  ;;  %v282_v40 = vpack.c.b16 %v273_v37, %v272_v24  ;;  %v279_v45 = vunpack.c.l.b16 %v261_v43 }
  0x45   :  { %2314 = vmatmul.msk.bf16.vlgmr.msra.gmra.mxu2 %vm288_vm2, %v275_v16  ;;  %v287_v18 = vsel %vm284_vm3, 0, %v280_v17  ;;  %557 = vmatpush.bf16.msrb.mxu0 %v2632_v29  ;;  %v380_v46 = vunpack.c.l.b16 %v262_v44  ;;  %v2637_v44 = vld [vmem:[%s3772_s11] sm:$0xff] }
  0x46   :  { %2307 = vmatmul.msk.bf16.vlgmr.msra.gmra.mxu0 %vm288_vm2, %v287_v18  ;;  %v283_v48 = vpack.c.b16 %v279_v45, %v274_v38  ;;  %505 = vmatpush.bf16.msra.mxu3 %v2634_v49 }
  0x47   :  { %v381_v47 = vpack.c.b16 %v380_v46, %v279_v45  ;;  %v2639_v45 = vld [vmem:[%s3772_s11 + $0x10] sm:$0xff] }
  0x48   :  { %605 = vmatpush.bf16.msrb.mxu1 %v2635_v34  ;;  %2689 = vmatpush.bf16.msra.mxu2 %v2642_v41 }
  0x49   :  { %558 = vmatpush.bf16.msrb.mxu0 %v2631_v33 }
  0x4a   :  { %506 = vmatpush.bf16.msra.mxu3 %v2633_v50 }
  0x4c   :  { %871 = vmatpush.bf16.msra.mxu1 %v2642_v41 }
  0x53   :  { %2311 = vmatmul.msk.bf16.gmra.mxu1 %vm288_vm2, %v275_v16 }
  0x55   :  { %2315 = vmatmul.msk.bf16.gmra.mxu2 %vm288_vm2, %v276_v25 }
  0x56   :  { %2308 = vmatmul.msk.bf16.gmra.mxu0 %vm288_vm2, %v281_v26 }
  0x63   :  { %2312 = vmatmul.msk.bf16.gmra.mxu1 %vm288_vm2, %v276_v25 }
  0x65   :  { %2316 = vmatmul.msk.bf16.gmra.mxu2 %vm288_vm2, %v277_v39 }
  0x66   :  { %2309 = vmatmul.msk.bf16.gmra.mxu0 %vm288_vm2, %v282_v40  ;;  %v2638_v40 = vld [vmem:[%s3772_s11 + $0x8] sm:$0xff] }
  0x67   :  { %822 = vmatpush.bf16.msra.mxu0 %v2638_v40 }
  0x6b   :  { %823 = vmatpush.bf16.msra.mxu0 %v2637_v44 }
  0x73   :  { %2313 = vmatmul.msk.bf16.gmra.mxu1 %vm288_vm2, %v277_v39 }
  0x75   :  { %2317 = vmatmul.msk.bf16.gmra.mxu2 %vm288_vm2, %v381_v47 }
  0x76   :  { %2310 = vmatmul.msk.bf16.gmra.mxu0 %vm288_vm2, %v283_v48 }
  0x85   :  { %2353 = vmatmul.msk.bf16.vlgmr.msrb.gmra.mxu2 %vm288_vm2, %v275_v16 }
  0x86   :  { %559 = vmatmul.bf16.vlgmr.msrb.gmra.mxu0 %v3013_v15 }
  0x95   :  { %2354 = vmatmul.msk.bf16.gmra.mxu2 %vm288_vm2, %v276_v25 }
  0xa5   :  { %2355 = vmatmul.msk.bf16.gmra.mxu2 %vm288_vm2, %v277_v39  ;;  %v2640_v39 = vld [vmem:[%s3772_s11 + $0x18] sm:$0xff] }
  0xa6   :  { %781 = vmatpush.bf16.msrb.mxu3 %v2640_v39 }
  0xaa   :  { %782 = vmatpush.bf16.msrb.mxu3 %v2639_v45 }
  0xb5   :  { %2356 = vmatmul.msk.bf16.gmra.mxu2 %vm288_vm2, %v381_v47 }
  0xc0   :  { %v359_v51 = vpop.f32.mrf.mxu1 }
  0xc3   :  { %v316_v52 = vpop.f32.mrf.mxu0 }
  0xc4   :  { %v360_v53 = vadd.f32 %v359_v51, %v316_v52 }
  0xc8   :  { %v397_v55 = vpop.f32.mrf.mxu2  ;;  %v361_v56 = vpop.f32.mrf.mxu1 }
  0xc9   :  { %v417_v57 = vadd.f32 %v397_v55, %v360_v53 }
  0xcb   :  { %v428_v58 = vadd.f32 %v3271_v54, %v417_v57  ;;  %v318_v59 = vpop.f32.mrf.mxu0 }
  0xcc   :  { %v362_v62 = vadd.f32 %v361_v56, %v318_v59 }
  0xcd   :  { %v436_v60 = vmax.f32 %v428_v58, 0.0 }
  0xcf   :  { %v444_v61 = vpack.c.bf16 %v436_v60, %v436_v60 }
  0xd0   :  { %v399_v63 = vpop.f32.mrf.mxu2  ;;  %v364_v0 = vpop.f32.mrf.mxu1 }
  0xd1   :  { %v458_v1 = vunpack.c.l.b16 %v444_v61  ;;  %v418_v2 = vadd.f32 %v399_v63, %v362_v62 }
  0xd3   :  { %v429_v3 = vadd.f32 %v3271_v54, %v418_v2  ;;  %v321_v4 = vpop.f32.mrf.mxu0  ;;  %v469_v5 = vpack.c.b16 %v458_v1, %v458_v1 }
  0xd4   :  { %v365_v7 = vadd.f32 %v364_v0, %v321_v4 }
  0xd5   :  { %v437_v6 = vmax.f32 %v429_v3, 0.0  ;;  %v474_v8 = vsel %vm284_vm3, 0, %v469_v5 }
  0xd6   :  { %2326 = vmatmul.msk.bf16.vlgmr.msra.gmra.mxu3 %vm487_vm4, %v474_v8 }
  0xd7   :  { %v445_v9 = vpack.c.bf16 %v437_v6, %v437_v6 }
  0xd8   :  { %v402_v10 = vpop.f32.mrf.mxu2  ;;  %v366_v11 = vpop.f32.mrf.mxu1 }
  0xd9   :  { %v459_v12 = vunpack.c.l.b16 %v445_v9  ;;  %v419_v13 = vadd.f32 %v402_v10, %v365_v7 }
  0xdb   :  { %v430_v14 = vadd.f32 %v3271_v54, %v419_v13  ;;  %v323_v16 = vpop.f32.mrf.mxu0  ;;  %v464_v17 = vpack.c.b16 %v459_v12, %v458_v1 }
  0xdc   :  { %v367_v20 = vadd.f32 %v366_v11, %v323_v16 }
  0xdd   :  { %v438_v18 = vmax.f32 %v430_v14, 0.0  ;;  %2338 = vmatmul.msk.bf16.gmra.mxu0 %vm487_vm4, %v464_v17  ;;  %2349 = vmatmul.msk.bf16.vlgmr.msrb.gmra.mxu1 %vm487_vm4, %v464_v17 }
  0xdf   :  { %v446_v19 = vpack.c.bf16 %v438_v18, %v438_v18 }
  0xe0   :  { %v404_v21 = vpop.f32.mrf.mxu2  ;;  %v369_v22 = vpop.f32.mrf.mxu1 }
  0xe1   :  { %v460_v23 = vunpack.c.l.b16 %v446_v19  ;;  %v420_v24 = vadd.f32 %v404_v21, %v367_v20  ;;  %v3317_v20 = vld [vmem:[%s3773_s15] ss:$0 sm:$0xff] }
  0xe2   :  { %v3322_v21 = vld [vmem:[%s3774_s5] ss:$0 sm:$0xff] }
  0xe3   :  { %v431_v25 = vadd.f32 %v3271_v54, %v420_v24  ;;  %v326_v26 = vpop.f32.mrf.mxu0  ;;  %v470_v27 = vpack.c.b16 %v460_v23, %v459_v12  ;;  %v2641_v12 = vld [vmem:[%s3772_s11 + $0x20] sm:$0xff]  ;;  %s3778_s11 = sld [smem:[#allocation25_spill]] }
  0xe4   :  { %v370_v29 = vadd.f32 %v369_v22, %v326_v26  ;;  %872 = vmatpush.bf16.msra.mxu1 %v2641_v12  ;;  %2690 = vmatpush.bf16.msra.mxu2 %v2641_v12 }
  0xe5   :  { %v439_v28 = vmax.f32 %v431_v25, 0.0 }
  0xe6   :  { %2327 = vmatmul.msk.bf16.gmra.mxu3 %vm487_vm4, %v470_v27 }
  0xe7   :  { %v447_v30 = vpack.c.bf16 %v439_v28, %v439_v28 }
  0xe8   :  { %v407_v31 = vpop.f32.mrf.mxu2  ;;  %v371_v34 = vpop.f32.mrf.mxu1 }
  0xe9   :  { %v461_v32 = vunpack.c.l.b16 %v447_v30  ;;  %v421_v33 = vadd.f32 %v407_v31, %v370_v29 }
  0xeb   :  { %v432_v35 = vadd.f32 %v3271_v54, %v421_v33  ;;  %v328_v36 = vpop.f32.mrf.mxu0  ;;  %v465_v37 = vpack.c.b16 %v461_v32, %v460_v23 }
  0xec   :  { %v372_v43 = vadd.f32 %v371_v34, %v328_v36 }
  0xed   :  { %v440_v38 = vmax.f32 %v432_v35, 0.0  ;;  %2339 = vmatmul.msk.bf16.gmra.mxu0 %vm487_vm4, %v465_v37  ;;  %2350 = vmatmul.msk.bf16.gmra.mxu1 %vm487_vm4, %v465_v37 }
  0xef   :  { %v448_v42 = vpack.c.bf16 %v440_v38, %v440_v38 }
  0xf0   :  { %v409_v46 = vpop.f32.mrf.mxu2  ;;  %v374_v52 = vpop.f32.mrf.mxu1 }
  0xf1   :  { %v462_v47 = vunpack.c.l.b16 %v448_v42  ;;  %v422_v48 = vadd.f32 %v409_v46, %v372_v43 }
  0xf3   :  { %v433_v49 = vadd.f32 %v3271_v54, %v422_v48  ;;  %v331_v50 = vpop.f32.mrf.mxu0  ;;  %v471_v51 = vpack.c.b16 %v462_v47, %v461_v32 }
  0xf4   :  { %v375_v55 = vadd.f32 %v374_v52, %v331_v50 }
  0xf5   :  { %v441_v53 = vmax.f32 %v433_v49, 0.0 }
  0xf6   :  { %2328 = vmatmul.msk.bf16.gmra.mxu3 %vm487_vm4, %v471_v51 }
  0xf7   :  { %v449_v56 = vpack.c.bf16 %v441_v53, %v441_v53 }
  0xf8   :  { %v412_v57 = vpop.f32.mrf.mxu2  ;;  %v376_v0 = vpop.f32.mrf.mxu1 }
  0xf9   :  { %v463_v58 = vunpack.c.l.b16 %v449_v56  ;;  %v423_v59 = vadd.f32 %v412_v57, %v375_v55 }
  0xfb   :  { %v434_v60 = vadd.f32 %v3271_v54, %v423_v59  ;;  %v466_v61 = vpack.c.b16 %v463_v58, %v462_v47  ;;  %v333_v62 = vpop.f32.mrf.mxu0 }
  0xfc   :  { %v377_v2 = vadd.f32 %v376_v0, %v333_v62 }
  0xfd   :  { %v442_v63 = vmax.f32 %v434_v60, 0.0  ;;  %2340 = vmatmul.msk.bf16.gmra.mxu0 %vm487_vm4, %v466_v61  ;;  %2351 = vmatmul.msk.bf16.gmra.mxu1 %vm487_vm4, %v466_v61 }
  0xff   :  { %v450_v1 = vpack.c.bf16 %v442_v63, %v442_v63 }
 0x100   :  { %v414_v3 = vpop.f32.mrf.mxu2 }
 0x101   :  { %v468_v4 = vunpack.c.l.b16 %v450_v1  ;;  %v424_v5 = vadd.f32 %v414_v3, %v377_v2 }
 0x103   :  { %v435_v6 = vadd.f32 %v3271_v54, %v424_v5  ;;  %v472_v7 = vpack.c.b16 %v468_v4, %v463_v58  ;;  %v560_v54 = vpop.f32.mrf.mxu0 }
 0x105   :  { %v443_v8 = vmax.f32 %v435_v6, 0.0 }
 0x106   :  { %2329 = vmatmul.msk.bf16.gmra.mxu3 %vm487_vm4, %v472_v7 }
 0x107   :  { %v451_v9 = vpack.c.bf16 %v443_v8, %v443_v8 }
 0x108   :  { %v669_v13 = vpop.f32.mrf.mxu2 }
 0x109   :  { %v581_v10 = vunpack.c.l.b16 %v451_v9  ;;  %v670_v25 = vadd.f32 %v3322_v21, %v669_v13 }
 0x10b   :  { %v582_v11 = vpack.c.b16 %v581_v10, %v468_v4  ;;  %v562_v14 = vpop.f32.mrf.mxu0 }
 0x10d   :  { %2352 = vmatmul.msk.bf16.gmra.mxu1 %vm487_vm4, %v582_v11  ;;  %824 = vmatmul.bf16.vlgmr.msra.gmra.mxu0 %v3013_v15 }
 0x110   :  { %v671_v17 = vpop.f32.mrf.mxu2 }
 0x111   :  { %v672_v35 = vadd.f32 %v3322_v21, %v671_v17 }
 0x116   :  { %783 = vmatmul.bf16.vlgmr.msrb.gmra.mxu3 %v3013_v15 }
 0x118   :  { %v674_v30 = vpop.f32.mrf.mxu2 }
 0x119   :  { %v675_v48 = vadd.f32 %v3322_v21, %v674_v30 }
 0x11d   :  { %829 = vmatmul.bf16.gmra.mxu0 %v3013_v15 }
 0x120   :  { %v676_v45 = vpop.f32.mrf.mxu2 }
 0x121   :  { %v677_v63 = vadd.f32 %v3322_v21, %v676_v45 }
 0x128   :  { %v679_v61 = vpop.f32.mrf.mxu2 }
 0x129   :  { %v680_v11 = vadd.f32 %v3322_v21, %v679_v61 }
 0x159   :  { %v508_v16 = vpop.f32.mrf.mxu3 }
 0x15a   :  { %v561_v18 = vadd.f32 %v560_v54, %v508_v16  ;;  %v607_v19 = vpop.f32.mrf.mxu1  ;;  %v565_v24 = vpop.f32.mrf.mxu0 }
 0x15c   :  { %v627_v22 = vadd.f32 %v607_v19, %v561_v18 }
 0x15e   :  { %v638_v23 = vadd.f32 %v3317_v20, %v627_v22 }
 0x160   :  { %v646_v26 = vmax.f32 %v638_v23, 0.0 }
 0x161   :  { %v510_v27 = vpop.f32.mrf.mxu3 }
 0x162   :  { %v563_v28 = vadd.f32 %v562_v14, %v510_v27  ;;  %v609_v29 = vpop.f32.mrf.mxu1  ;;  %v689_v31 = vadd.f32 %v670_v25, %v646_v26  ;;  %v567_v37 = vpop.f32.mrf.mxu0  ;;  %v2648_v25 = vld [vmem:[%s3775_s21 + $0x28] sm:$0xff]  ;;  %v2646_v26 = vld [vmem:[%s3775_s21 + $0x18] sm:$0xff] }
 0x163   :  { %v681_v14 = vpop.f32.mrf.mxu2  ;;  %1061 = vmatpush.bf16.msrb.mxu0 %v2648_v25  ;;  %971 = vmatpush.bf16.msrb.mxu2 %v2646_v26 }
 0x164   :  { %v628_v32 = vadd.f32 %v609_v29, %v563_v28  ;;  %v3327_v34 = vmax.f32 %v689_v31, 0.0  ;;  %v2643_v28 = vld [vmem:[%s3775_s21] sm:$0xff] }
 0x165   :  { %v2647_v29 = vld [vmem:[%s3775_s21 + $0x20] sm:$0xff] }
 0x166   :  { %v639_v33 = vadd.f32 %v3317_v20, %v628_v32  ;;  %v731_v44 = vpack.c.bf16 %v3327_v34, %v3327_v34  ;;  %v682_v32 = vadd.f32 %v3322_v21, %v681_v14 }
 0x167   :  { %1062 = vmatpush.bf16.msrb.mxu0 %v2647_v29 }
 0x168   :  { %v647_v36 = vmax.f32 %v639_v33, 0.0  ;;  %v743_v50 = vunpack.c.l.b16 %v731_v44 }
 0x169   :  { %v513_v38 = vpop.f32.mrf.mxu3 }
 0x16a   :  { %v690_v39 = vadd.f32 %v672_v35, %v647_v36  ;;  %v566_v40 = vadd.f32 %v565_v24, %v513_v38  ;;  %v612_v41 = vpop.f32.mrf.mxu1  ;;  %v570_v57 = vpop.f32.mrf.mxu0  ;;  %v2644_v24 = vld [vmem:[%s3775_s21 + $0x8] sm:$0xff] }
 0x16b   :  { %1012 = vmatpush.bf16.msra.mxu3 %v2644_v24 }
 0x16c   :  { %v3330_v42 = vmax.f32 %v690_v39, 0.0  ;;  %v629_v43 = vadd.f32 %v612_v41, %v566_v40  ;;  %v684_v39 = vpop.f32.mrf.mxu2 }
 0x16e   :  { %v640_v46 = vadd.f32 %v3317_v20, %v629_v43  ;;  %v732_v47 = vpack.c.bf16 %v3330_v42, %v3330_v42 }
 0x16f   :  { %1013 = vmatpush.bf16.msra.mxu3 %v2643_v28 }
 0x170   :  { %v648_v49 = vmax.f32 %v640_v46, 0.0  ;;  %v744_v51 = vunpack.c.l.b16 %v732_v47  ;;  %v685_v46 = vadd.f32 %v3322_v21, %v684_v39 }
 0x171   :  { %v515_v52 = vpop.f32.mrf.mxu3 }
 0x172   :  { %v568_v53 = vadd.f32 %v567_v37, %v515_v52  ;;  %v614_v55 = vpop.f32.mrf.mxu1  ;;  %v747_v56 = vpack.c.b16 %v744_v51, %v743_v50  ;;  %v691_v58 = vadd.f32 %v675_v48, %v648_v49  ;;  %v572_v8 = vpop.f32.mrf.mxu0 }
 0x174   :  { %v630_v59 = vadd.f32 %v614_v55, %v568_v53  ;;  %2365 = vmatmul.msk.bf16.gmra.mxu3 %vm487_vm4, %v747_v56  ;;  %2376 = vmatmul.msk.bf16.gmra.mxu0 %vm487_vm4, %v747_v56  ;;  %v3342_v62 = vmax.f32 %v691_v58, 0.0  ;;  %v686_v58 = vpop.f32.mrf.mxu2 }
 0x175   :  { %2386 = vmatmul.msk.bf16.vlgmr.msra.gmra.mxu1 %vm487_vm4, %v747_v56  ;;  %v687_v61 = vadd.f32 %v3322_v21, %v686_v58 }
 0x176   :  { %v641_v60 = vadd.f32 %v3317_v20, %v630_v59  ;;  %v733_v7 = vpack.c.bf16 %v3342_v62, %v3342_v62 }
 0x178   :  { %v649_v0 = vmax.f32 %v641_v60, 0.0  ;;  %v745_v54 = vunpack.c.l.b16 %v733_v7 }
 0x179   :  { %v518_v1 = vpop.f32.mrf.mxu3 }
 0x17a   :  { %v692_v2 = vadd.f32 %v677_v63, %v649_v0  ;;  %v571_v3 = vadd.f32 %v570_v57, %v518_v1  ;;  %v617_v4 = vpop.f32.mrf.mxu1  ;;  %v575_v30 = vpop.f32.mrf.mxu0 }
 0x17c   :  { %v3345_v5 = vmax.f32 %v692_v2, 0.0  ;;  %v631_v6 = vadd.f32 %v617_v4, %v571_v3 }
 0x17e   :  { %v642_v9 = vadd.f32 %v3317_v20, %v631_v6  ;;  %v734_v10 = vpack.c.bf16 %v3345_v5, %v3345_v5 }
 0x180   :  { %v650_v12 = vmax.f32 %v642_v9, 0.0  ;;  %v746_v13 = vunpack.c.l.b16 %v734_v10 }
 0x181   :  { %v520_v16 = vpop.f32.mrf.mxu3 }
 0x182   :  { %v573_v17 = vadd.f32 %v572_v8, %v520_v16  ;;  %v619_v18 = vpop.f32.mrf.mxu1  ;;  %v748_v19 = vpack.c.b16 %v746_v13, %v745_v54  ;;  %v693_v22 = vadd.f32 %v680_v11, %v650_v12  ;;  %v577_v50 = vpop.f32.mrf.mxu0  ;;  %v3405_v13 = vld [vmem:[%s3776_s7] ss:$0 sm:$0xff] }
 0x184   :  { %v632_v23 = vadd.f32 %v619_v18, %v573_v17  ;;  %2366 = vmatmul.msk.bf16.gmra.mxu3 %vm487_vm4, %v748_v19  ;;  %2377 = vmatmul.msk.bf16.gmra.mxu0 %vm487_vm4, %v748_v19  ;;  %v3372_v31 = vmax.f32 %v693_v22, 0.0 }
 0x185   :  { %2387 = vmatmul.msk.bf16.gmra.mxu1 %vm487_vm4, %v748_v19 }
 0x186   :  { %v643_v27 = vadd.f32 %v3317_v20, %v632_v23  ;;  %v735_v43 = vpack.c.bf16 %v3372_v31, %v3372_v31 }
 0x188   :  { %v651_v33 = vmax.f32 %v643_v27, 0.0  ;;  %v751_v48 = vunpack.c.l.b16 %v735_v43 }
 0x189   :  { %v523_v35 = vpop.f32.mrf.mxu3 }
 0x18a   :  { %v694_v36 = vadd.f32 %v682_v32, %v651_v33  ;;  %v576_v37 = vadd.f32 %v575_v30, %v523_v35  ;;  %v622_v38 = vpop.f32.mrf.mxu1  ;;  %v825_v8 = vpop.f32.mrf.mxu0 }
 0x18c   :  { %v3375_v40 = vmax.f32 %v694_v36, 0.0  ;;  %v633_v41 = vadd.f32 %v622_v38, %v576_v37 }
 0x18e   :  { %v644_v44 = vadd.f32 %v3317_v20, %v633_v41  ;;  %v736_v45 = vpack.c.bf16 %v3375_v40, %v3375_v40 }
 0x190   :  { %v652_v47 = vmax.f32 %v644_v44, 0.0  ;;  %v752_v49 = vunpack.c.l.b16 %v736_v45 }
 0x191   :  { %v525_v51 = vpop.f32.mrf.mxu3 }
 0x192   :  { %v578_v52 = vadd.f32 %v577_v50, %v525_v51  ;;  %v624_v53 = vpop.f32.mrf.mxu1  ;;  %v753_v55 = vpack.c.b16 %v752_v49, %v751_v48  ;;  %v695_v56 = vadd.f32 %v685_v46, %v652_v47  ;;  %v827_v11 = vpop.f32.mrf.mxu0 }
 0x194   :  { %v634_v57 = vadd.f32 %v624_v53, %v578_v52  ;;  %2367 = vmatmul.msk.bf16.gmra.mxu3 %vm487_vm4, %v753_v55  ;;  %2388 = vmatmul.msk.bf16.vlgmr.msra.gmra.mxu2 %vm487_vm4, %v753_v55  ;;  %v3386_v60 = vmax.f32 %v695_v56, 0.0 }
 0x196   :  { %v645_v59 = vadd.f32 %v3317_v20, %v634_v57  ;;  %v737_v2 = vpack.c.bf16 %v3386_v60, %v3386_v60  ;;  %v2645_v20 = vld [vmem:[%s3775_s21 + $0x10] sm:$0xff] }
 0x197   :  { %972 = vmatpush.bf16.msrb.mxu2 %v2645_v20 }
 0x198   :  { %v653_v63 = vmax.f32 %v645_v59, 0.0  ;;  %v847_v4 = vunpack.c.l.b16 %v737_v2 }
 0x199   :  { %v784_v21 = vpop.f32.mrf.mxu3 }
 0x19a   :  { %v696_v0 = vadd.f32 %v687_v61, %v653_v63  ;;  %v826_v9 = vadd.f32 %v825_v8, %v784_v21  ;;  %v830_v19 = vpop.f32.mrf.mxu0 }
 0x19c   :  { %v3389_v1 = vmax.f32 %v696_v0, 0.0 }
 0x19e   :  { %v738_v3 = vpack.c.bf16 %v3389_v1, %v3389_v1 }
 0x1a0   :  { %v848_v6 = vunpack.c.l.b16 %v738_v3 }
 0x1a1   :  { %v786_v10 = vpop.f32.mrf.mxu3 }
 0x1a2   :  { %v849_v7 = vpack.c.b16 %v848_v6, %v847_v4  ;;  %v828_v16 = vadd.f32 %v827_v11, %v786_v10  ;;  %v832_v36 = vpop.f32.mrf.mxu0 }
 0x1a4   :  { %2389 = vmatmul.msk.bf16.gmra.mxu2 %vm487_vm4, %v849_v7  ;;  %1014 = vmatmul.bf16.vlgmr.msra.gmra.mxu3 %v3013_v15 }
 0x1b4   :  { %1019 = vmatmul.bf16.gmra.mxu3 %v3013_v15  ;;  %973 = vmatmul.bf16.vlgmr.msrb.gmra.mxu2 %v3013_v15 }
 0x1f1   :  { %v835_v47 = vpop.f32.mrf.mxu0 }
 0x1f2   :  { %v874_v12 = vpop.f32.mrf.mxu1 }
 0x1f3   :  { %v894_v54 = vadd.f32 %v874_v12, %v826_v9 }
 0x1f5   :  { %v905_v14 = vadd.f32 %v3405_v13, %v894_v54 }
 0x1f7   :  { %v789_v17 = vpop.f32.mrf.mxu3  ;;  %v913_v22 = vmax.f32 %v905_v14, 0.0 }
 0x1f8   :  { %v831_v27 = vadd.f32 %v830_v19, %v789_v17 }
 0x1f9   :  { %v921_v25 = vpack.c.bf16 %v913_v22, %v913_v22  ;;  %v837_v59 = vpop.f32.mrf.mxu0 }
 0x1fa   :  { %v876_v18 = vpop.f32.mrf.mxu1 }
 0x1fb   :  { %v895_v23 = vadd.f32 %v876_v18, %v828_v16  ;;  %v933_v30 = vunpack.c.l.b16 %v921_v25 }
 0x1fd   :  { %v906_v24 = vadd.f32 %v3405_v13, %v895_v23 }
 0x1ff   :  { %v914_v26 = vmax.f32 %v906_v24, 0.0  ;;  %v791_v33 = vpop.f32.mrf.mxu3 }
 0x200   :  { %v833_v39 = vadd.f32 %v832_v36, %v791_v33 }
 0x201   :  { %v922_v28 = vpack.c.bf16 %v914_v26, %v914_v26  ;;  %v840_v7 = vpop.f32.mrf.mxu0 }
 0x202   :  { %v879_v29 = vpop.f32.mrf.mxu1 }
 0x203   :  { %v934_v32 = vunpack.c.l.b16 %v922_v28  ;;  %v896_v35 = vadd.f32 %v879_v29, %v831_v27 }
 0x205   :  { %v937_v37 = vpack.c.b16 %v934_v32, %v933_v30  ;;  %v907_v38 = vadd.f32 %v3405_v13, %v896_v35 }
 0x207   :  { %2398 = vmatmul.msk.bf16.gmra.mxu2 %vm487_vm4, %v937_v37  ;;  %2409 = vmatmul.msk.bf16.gmra.mxu3 %vm487_vm4, %v937_v37  ;;  %v915_v43 = vmax.f32 %v907_v38, 0.0  ;;  %v794_v45 = vpop.f32.mrf.mxu3 }
 0x208   :  { %2419 = vmatmul.msk.bf16.vlgmr.msrb.gmra.mxu0 %vm487_vm4, %v937_v37  ;;  %v836_v55 = vadd.f32 %v835_v47, %v794_v45 }
 0x209   :  { %v923_v48 = vpack.c.bf16 %v915_v43, %v915_v43  ;;  %v842_v18 = vpop.f32.mrf.mxu0 }
 0x20a   :  { %v881_v41 = vpop.f32.mrf.mxu1 }
 0x20b   :  { %v897_v44 = vadd.f32 %v881_v41, %v833_v39  ;;  %v935_v51 = vunpack.c.l.b16 %v923_v48  ;;  %v3427_v39 = vld [vmem:[%s3777_s17] ss:$0 sm:$0xff] }
 0x20d   :  { %v908_v46 = vadd.f32 %v3405_v13, %v897_v44 }
 0x20f   :  { %v916_v49 = vmax.f32 %v908_v46, 0.0  ;;  %v796_v56 = vpop.f32.mrf.mxu3 }
 0x210   :  { %v838_v63 = vadd.f32 %v837_v59, %v796_v56 }
 0x211   :  { %v924_v50 = vpack.c.bf16 %v916_v49, %v916_v49 }
 0x213   :  { %v936_v52 = vunpack.c.l.b16 %v924_v50 }
 0x215   :  { %v938_v53 = vpack.c.b16 %v936_v52, %v935_v51 }
 0x217   :  { %2399 = vmatmul.msk.bf16.gmra.mxu2 %vm487_vm4, %v938_v53  ;;  %2410 = vmatmul.msk.bf16.gmra.mxu3 %vm487_vm4, %v938_v53  ;;  %v884_v57 = vpop.f32.mrf.mxu2  ;;  %v799_v4 = vpop.f32.mrf.mxu3 }
 0x218   :  { %2420 = vmatmul.msk.bf16.gmra.mxu0 %vm487_vm4, %v938_v53  ;;  %v898_v58 = vadd.f32 %v884_v57, %v836_v55  ;;  %v841_v8 = vadd.f32 %v840_v7, %v799_v4 }
 0x21a   :  { %v909_v61 = vadd.f32 %v3405_v13, %v898_v58 }
 0x21c   :  { %v917_v2 = vmax.f32 %v909_v61, 0.0 }
 0x21e   :  { %v925_v20 = vpack.c.bf16 %v917_v2, %v917_v2 }
 0x21f   :  { %v886_v0 = vpop.f32.mrf.mxu2  ;;  %v801_v16 = vpop.f32.mrf.mxu3 }
 0x220   :  { %v899_v3 = vadd.f32 %v886_v0, %v838_v63  ;;  %v941_v11 = vunpack.c.l.b16 %v925_v20  ;;  %v843_v19 = vadd.f32 %v842_v18, %v801_v16  ;;  %v2663_v16 = vld [vmem:[%s3734_s12 + $0x70] sm:$0xff] }
 0x222   :  { %v910_v6 = vadd.f32 %v3405_v13, %v899_v3 }
 0x224   :  { %v918_v21 = vmax.f32 %v910_v6, 0.0 }
 0x226   :  { %v926_v9 = vpack.c.bf16 %v918_v21, %v918_v21 }
 0x227   :  { %v889_v10 = vpop.f32.mrf.mxu2  ;;  %v1015_v33 = vpop.f32.mrf.mxu3 }
 0x228   :  { %v942_v12 = vunpack.c.l.b16 %v926_v9  ;;  %v900_v54 = vadd.f32 %v889_v10, %v841_v8  ;;  %v2664_v9 = vld [vmem:[%s3734_s12 + $0x78] sm:$0xff] }
 0x229   :  { %1306 = vmatpush.bf16.msra.mxu2 %v2664_v9 }
 0x22a   :  { %v943_v14 = vpack.c.b16 %v942_v12, %v941_v11  ;;  %v911_v17 = vadd.f32 %v3405_v13, %v900_v54  ;;  %v2656_v11 = vld [vmem:[%s3734_s12 + $0x38] sm:$0xff] }
 0x22b   :  { %1293 = vmatpush.bf16.msrb.mxu1 %v2656_v11 }
 0x22c   :  { %2400 = vmatmul.msk.bf16.gmra.mxu2 %vm487_vm4, %v943_v14  ;;  %2421 = vmatmul.msk.bf16.gmra.mxu0 %vm487_vm4, %v943_v14  ;;  %v919_v23 = vmax.f32 %v911_v17, 0.0  ;;  %v2655_v17 = vld [vmem:[%s3734_s12 + $0x30] sm:$0xff] }
 0x22d   :  { %1307 = vmatpush.bf16.msra.mxu2 %v2663_v16 }
 0x22e   :  { %v927_v26 = vpack.c.bf16 %v919_v23, %v919_v23 }
 0x22f   :  { %v891_v22 = vpop.f32.mrf.mxu2  ;;  %v1017_v37 = vpop.f32.mrf.mxu3  ;;  %1294 = vmatpush.bf16.msrb.mxu1 %v2655_v17 }
 0x230   :  { %v901_v24 = vadd.f32 %v891_v22, %v843_v19  ;;  %v1037_v29 = vunpack.c.l.b16 %v927_v26 }
 0x232   :  { %v912_v25 = vadd.f32 %v3405_v13, %v901_v24 }
 0x234   :  { %v920_v27 = vmax.f32 %v912_v25, 0.0 }
 0x236   :  { %v928_v28 = vpack.c.bf16 %v920_v27, %v920_v27 }
 0x237   :  { %v974_v35 = vpop.f32.mrf.mxu2  ;;  %v1020_v13 = vpop.f32.mrf.mxu3 }
 0x238   :  { %v1038_v30 = vunpack.c.l.b16 %v928_v28  ;;  %v1016_v36 = vadd.f32 %v1015_v33, %v974_v35 }
 0x23a   :  { %v1039_v32 = vpack.c.b16 %v1038_v30, %v1037_v29 }
 0x23c   :  { %2422 = vmatmul.msk.bf16.gmra.mxu0 %vm487_vm4, %v1039_v32  ;;  %v2661_v32 = vld [vmem:[%s3734_s12 + $0x60] sm:$0xff] }
 0x23f   :  { %v976_v38 = vpop.f32.mrf.mxu2  ;;  %v1022_v47 = vpop.f32.mrf.mxu3 }
 0x240   :  { %v1018_v55 = vadd.f32 %v1017_v37, %v976_v38 }
 0x285   :  { %v1064_v41 = vpop.f32.mrf.mxu0 }
 0x286   :  { %v1084_v43 = vadd.f32 %v1064_v41, %v1016_v36 }
 0x288   :  { %v3430_v44 = vadd.f32 %v3427_v39, %v1084_v43 }
 0x28a   :  { %v979_v45 = vpop.f32.mrf.mxu2  ;;  %v1025_v50 = vpop.f32.mrf.mxu3 }
 0x28b   :  { %v1021_v2 = vadd.f32 %v1020_v13, %v979_v45 }
 0x28d   :  { %v1066_v46 = vpop.f32.mrf.mxu0 }
 0x28e   :  { %v1085_v57 = vadd.f32 %v1066_v46, %v1018_v55 }
 0x290   :  { %v1096_v0 = vadd.f32 %v3427_v39, %v1085_v57  ;;  %v2657_v57 = vld [vmem:[%s3734_s12 + $0x40] sm:$0xff] }
 0x292   :  { %v981_v48 = vpop.f32.mrf.mxu2  ;;  %v1027_v59 = vpop.f32.mrf.mxu3  ;;  %v1104_v6 = vmax.f32 %v1096_v0, 0.0 }
 0x293   :  { %v1023_v35 = vadd.f32 %v1022_v47, %v981_v48 }
 0x294   :  { %v1112_v14 = vadd.f32 %v1104_v6, %v3330_v42  ;;  %v2662_v42 = vld [vmem:[%s3734_s12 + $0x68] sm:$0xff] }
 0x295   :  { %v1069_v49 = vpop.f32.mrf.mxu0  ;;  %1308 = vmatpush.bf16.msra.mxu2 %v2662_v42 }
 0x296   :  { %v1086_v7 = vadd.f32 %v1069_v49, %v1021_v2  ;;  %v1120_v25 = vmax.f32 %v1112_v14, 0.0 }
 0x298   :  { %v1097_v12 = vadd.f32 %v3427_v39, %v1086_v7 }
 0x299   :  { %1309 = vmatpush.bf16.msra.mxu2 %v2661_v32 }
 0x29a   :  { %v984_v51 = vpop.f32.mrf.mxu2  ;;  %v1030_v10 = vpop.f32.mrf.mxu3  ;;  %v1105_v23 = vmax.f32 %v1097_v12, 0.0 }
 0x29b   :  { %v1026_v52 = vadd.f32 %v1025_v50, %v984_v51 }
 0x29d   :  { %v1071_v53 = vpop.f32.mrf.mxu0 }
 0x29e   :  { %v1087_v41 = vadd.f32 %v1071_v53, %v1023_v35 }
 0x2a0   :  { %v1098_v50 = vadd.f32 %v3427_v39, %v1087_v41 }
 0x2a2   :  { %v986_v61 = vpop.f32.mrf.mxu2  ;;  %v1032_v33 = vpop.f32.mrf.mxu3  ;;  %v1106_v51 = vmax.f32 %v1098_v50, 0.0  ;;  %v2668_v50 = vld [vmem:[%s3738_s16] sm:$0xff] }
 0x2a3   :  { %v1028_v3 = vadd.f32 %v1027_v59, %v986_v61  ;;  %v2650_v59 = vld [vmem:[%s3734_s12 + $0x8] sm:$0xff]  ;;  %v2649_v61 = vld [vmem:[%s3734_s12] sm:$0xff] }
 0x2a4   :  { %v1114_v53 = vadd.f32 %v1106_v51, %v3345_v5  ;;  %v2652_v5 = vld [vmem:[%s3734_s12 + $0x18] sm:$0xff] }
 0x2a6   :  { %v1122_v55 = vmax.f32 %v1114_v53, 0.0 }
 0x2a9   :  { %v1074_v56 = vpop.f32.mrf.mxu0 }
 0x2aa   :  { %v1088_v58 = vadd.f32 %v1074_v56, %v1026_v52  ;;  %v2658_v56 = vld [vmem:[%s3734_s12 + $0x48] sm:$0xff] }
 0x2ac   :  { %v3433_v63 = vadd.f32 %v3427_v39, %v1088_v58  ;;  %v2651_v58 = vld [vmem:[%s3734_s12 + $0x10] sm:$0xff] }
 0x2ae   :  { %v1107_v2 = vmax.f32 %v3433_v63, 0.0 }
 0x2af   :  { %v989_v21 = vpop.f32.mrf.mxu2 }
 0x2b0   :  { %v1031_v18 = vadd.f32 %v1030_v10, %v989_v21 }
 0x2b1   :  { %v1076_v4 = vpop.f32.mrf.mxu0 }
 0x2b2   :  { %v1089_v20 = vadd.f32 %v1076_v4, %v1028_v3  ;;  %v1115_v3 = vadd.f32 %v1107_v2, %v3372_v31 }
 0x2b4   :  { %v1100_v8 = vadd.f32 %v3427_v39, %v1089_v20  ;;  %v1103_v20 = vmax.f32 %v3430_v44, 0.0  ;;  %v1123_v21 = vmax.f32 %v1115_v3, 0.0 }
 0x2b6   :  { %v1108_v54 = vmax.f32 %v1100_v8, 0.0  ;;  %v1111_v11 = vadd.f32 %v1103_v20, %v3327_v34  ;;  %v2723_v34 = vld [vmem:[#allocation2] ss:$0 sm:$0xff] }
 0x2b7   :  { %v991_v29 = vpop.f32.mrf.mxu2 }
 0x2b8   :  { %v1116_v19 = vadd.f32 %v1108_v54, %v3375_v40  ;;  %v1113_v40 = vadd.f32 %v1105_v23, %v3342_v62  ;;  %v1033_v36 = vadd.f32 %v1032_v33, %v991_v29  ;;  %v2660_v62 = vld [vmem:[%s3734_s12 + $0x58] sm:$0xff]  ;;  %v1119_v31 = vmax.f32 %v1111_v11, 0.0  ;;  %v2665_v23 = vld [vmem:[#allocation4] sm:$0xff] }
 0x2b9   :  { %v1079_v22 = vpop.f32.mrf.mxu0  ;;  %1310 = vmatpush.bf16.msra.mxu2 %v2660_v62  ;;  %v1319_v33 = vld [vmem:[%s3778_s11] sm:$0xff]  ;;  %v2669_v62 = vld [vmem:[%s3738_s16 + $0x8] sm:$0xff] }
 0x2ba   :  { %v1090_v24 = vadd.f32 %v1079_v22, %v1031_v18  ;;  %v1124_v26 = vmax.f32 %v1116_v19, 0.0  ;;  %v1121_v43 = vmax.f32 %v1113_v40, 0.0  ;;  %v2666_v22 = vld [vmem:[#allocation4 + $0x8] sm:$0xff] }
 0x2bb   :  { %1376 = vmatpush.bf16.msrb.mxu3 %v2666_v22 }
 0x2bc   :  { %v1101_v27 = vadd.f32 %v3427_v39, %v1090_v24  ;;  %v2708_v28 = vpack.i.bf16 %v1120_v25, %v1124_v26  ;;  %v2667_v24 = vld [vmem:[#allocation4 + $0x10] sm:$0xff] }
 0x2be   :  { %v1109_v30 = vmax.f32 %v1101_v27, 0.0  ;;  %2709 = vrot.lane.b32.xlu0 %v2708_v28, %s3014_s22 }
 0x2bf   :  { %1607 = vmatpush.bf16.msra.mxu3 %v2669_v62 }
 0x2c0   :  { %v1117_v37 = vadd.f32 %v1109_v30, %v3386_v60  ;;  %v2659_v60 = vld [vmem:[%s3734_s12 + $0x50] sm:$0xff] }
 0x2c1   :  { %v1081_v38 = vpop.f32.mrf.mxu0  ;;  %1311 = vmatpush.bf16.msra.mxu2 %v2659_v60  ;;  %v2672_v60 = vld [vmem:[%s3738_s16 + $0x20] sm:$0xff] }
 0x2c2   :  { %v1091_v13 = vadd.f32 %v1081_v38, %v1033_v36  ;;  %v1125_v45 = vmax.f32 %v1117_v37, 0.0 }
 0x2c3   :  { %1608 = vmatpush.bf16.msra.mxu3 %v2668_v50 }
 0x2c4   :  { %v1102_v46 = vadd.f32 %v3427_v39, %v1091_v13  ;;  %v2713_v49 = vpack.i.bf16 %v1121_v43, %v1125_v45  ;;  %v2654_v39 = vld [vmem:[%s3734_s12 + $0x28] sm:$0xff]  ;;  %v2674_v45 = vld [vmem:[%s3740_s18] sm:$0xff] }
 0x2c5   :  { %1295 = vmatpush.bf16.msrb.mxu1 %v2654_v39  ;;  %1312 = vmatpush.bf16.msra.mxu2 %v2658_v56 }
 0x2c6   :  { %2714 = vrot.lane.b32.xlu0 %v2713_v49, %s3001_s10  ;;  %v1110_v47 = vmax.f32 %v1102_v46, 0.0  ;;  %v2671_v46 = vld [vmem:[%s3738_s16 + $0x18] sm:$0xff]  ;;  %v2673_v49 = vld [vmem:[%s3738_s16 + $0x28] sm:$0xff] }
 0x2c7   :  { %1557 = vmatpush.bf16.msra.mxu0 %v2671_v46 }
 0x2c8   :  { %v1118_v48 = vadd.f32 %v1110_v47, %v3389_v1  ;;  %v2653_v1 = vld [vmem:[%s3734_s12 + $0x20] sm:$0xff]  ;;  %s3016_s12 = smov 112   ;;  %v2670_v47 = vld [vmem:[%s3738_s16 + $0x10] sm:$0xff] }
 0x2c9   :  { %1296 = vmatpush.bf16.msrb.mxu1 %v2653_v1  ;;  %1313 = vmatpush.bf16.msra.mxu2 %v2657_v57 }
 0x2ca   :  { %v1126_v52 = vmax.f32 %v1118_v48, 0.0 }
 0x2cb   :  { %1558 = vmatpush.bf16.msra.mxu0 %v2670_v47 }
 0x2cc   :  { %1181 = vrot.lane.b32.xlu1 %v1126_v52, %s3015_s14 }
 0x2cd   :  { %1297 = vmatpush.bf16.msrb.mxu1 %v2652_v5  ;;  %1448 = vmatpush.bf16.msrb.mxu2 %v2667_v24  ;;  %v3550_v5 = vld [vmem:[#allocation6] ss:$0 sm:$0xff] }
 0x2d1   :  { %1298 = vmatpush.bf16.msrb.mxu1 %v2651_v58 }
 0x2d4   :  { %1169 = vrot.lane.b32.xlu1 %v1122_v55, %s3015_s14 }
 0x2d5   :  { %1299 = vmatpush.bf16.msrb.mxu1 %v2650_v59 }
 0x2d9   :  { %1300 = vmatpush.bf16.msrb.mxu1 %v2649_v61 }
 0x2dd   :  { %1413 = vmatpush.bf16.msra.mxu1 %v2665_v23 }
 0x330   :  { %v2710_v0 = vpop.permute.xlu0 %2709 }
 0x331   :  { %v2711_v6 = vunpack.i.l.bf16 %v2710_v0  ;;  %v2712_v14 = vunpack.i.h.bf16 %v2710_v0 }
 0x333   :  { %v1189_v8 = vsel %vm487_vm4, %v1123_v21, %v2711_v6  ;;  %v1184_v16 = vsel %vm487_vm4, %v1119_v31, %v2712_v14 }
 0x338   :  { %v2715_v4 = vpop.permute.xlu0 %2714 }
 0x339   :  { %v2716_v7 = vunpack.i.l.bf16 %v2715_v4  ;;  %v2717_v63 = vunpack.i.h.bf16 %v2715_v4 }
 0x33b   :  { %v1190_v9 = vsel %vm1185_vm5, %v1189_v8, %v2716_v7  ;;  %v1186_v17 = vsel %vm1185_vm5, %v1184_v16, %v2717_v63 }
 0x33e   :  { %v1182_v10 = vpop.permute.xlu1 %1181 }
 0x33f   :  { %v1191_v12 = vsel %vm1187_vm6, %v1190_v9, %v1182_v10 }
 0x340   :  { %v1193_v54 = vpack.c.bf16 %v1191_v12, %v1191_v12 }
 0x342   :  { %1314 = vmatmul.bf16.vlgmr.msra.gmra.mxu2 %v1193_v54 }
 0x343   :  { %1720 = vmatpush.bf16.msra.mxu2 %v2674_v45 }
 0x346   :  { %v1170_v18 = vpop.permute.xlu1 %1169 }
 0x347   :  { %v1188_v44 = vsel %vm1187_vm6, %v1186_v17, %v1170_v18 }
 0x348   :  { %v1192_v19 = vpack.c.bf16 %v1188_v44, %v1188_v44 }
 0x34a   :  { %1301 = vmatmul.bf16.vlgmr.msrb.gmra.mxu1 %v1192_v19 }
 0x34b   :  { %1654 = vmatpush.bf16.msrb.mxu1 %v2673_v49 }
 0x34f   :  { %1655 = vmatpush.bf16.msrb.mxu1 %v2672_v60 }
 0x35a   :  { %1414 = vmatmul.bf16.vlgmr.msra.gmra.mxu1 %v3013_v15 }
 0x3c5   :  { %v1315_v25 = vpop.f32.mrf.mxu2 }
 0x3c7   :  { %v1302_v26 = vpop.f32.mrf.mxu1 }
 0x3c8   :  { %v1303_v42 = vadd.f32 %v2723_v34, %v1302_v26 }
 0x3ca   :  { %v1316_v27 = vadd.f32 %v1315_v25, %v1303_v42 }
 0x3cc   :  { %v1320_v28 = vmul.f32 0.5, %v1316_v27 }
 0x3cd   :  { %v1317_v29 = vpop.f32.mrf.mxu2 }
 0x3ce   :  { %v1321_v30 = vmul.f32 1.442695, %v1320_v28 }
 0x3cf   :  { %v1304_v40 = vpop.f32.mrf.mxu1 }
 0x3d0   :  { %2730 = vpow2.f32 %v1321_v30 }
 0x3d6   :  { %v2731_v32 = vpop.eup %2730 }
 0x3d7   :  { %1324 = vrot.lane.b32.xlu2 %v2731_v32, %s3016_s12  ;;  %v1415_v53 = vpop.f32.mrf.mxu1 }
 0x3df   :  { %v1417_v55 = vpop.f32.mrf.mxu1 }
 0x431   :  { %v1325_v35 = vpop.permute.xlu2 %1324 }
 0x432   :  { %v1327_v36 = vmul.f32 %v1325_v35, %v1319_v33 }
 0x434   :  { %v1328_v37 = vadd.f32 %v1327_v36, %v1316_v27 }
 0x436   :  { %v1352_v38 = vpack.c.bf16 %v1328_v37, %v1328_v37  ;;  %2286 = vrot.lane.b32.xlu2 %v1328_v37, %s3014_s22 }
 0x438   :  { %v1354_v41 = vunpack.c.l.b16 %v1352_v38 }
 0x43a   :  { %v1355_v13 = vpack.c.b16 %v1354_v41, %v1354_v41 }
 0x43c   :  { %2499 = vmatmul.msk.bf16.gmra.mxu1 %vm1364_vm7, %v1355_v13  ;;  %2506 = vmatmul.msk.bf16.vlgmr.msrb.gmra.mxu2 %vm1364_vm7, %v1355_v13  ;;  %v1357_v43 = vsel %vm284_vm3, 0, %v1355_v13 }
 0x43d   :  { %2491 = vmatmul.msk.bf16.vlgmr.msrb.gmra.mxu3 %vm1364_vm7, %v1357_v43 }
 0x44c   :  { %2500 = vmatmul.msk.bf16.gmra.mxu1 %vm1364_vm7, %v1355_v13  ;;  %2507 = vmatmul.msk.bf16.gmra.mxu2 %vm1364_vm7, %v1355_v13 }
 0x44d   :  { %2492 = vmatmul.msk.bf16.gmra.mxu3 %vm1364_vm7, %v1355_v13 }
 0x45c   :  { %2501 = vmatmul.msk.bf16.gmra.mxu1 %vm1364_vm7, %v1355_v13  ;;  %2508 = vmatmul.msk.bf16.gmra.mxu2 %vm1364_vm7, %v1355_v13 }
 0x45d   :  { %2493 = vmatmul.msk.bf16.gmra.mxu3 %vm1364_vm7, %v1355_v13 }
 0x46c   :  { %2509 = vmatmul.msk.bf16.gmra.mxu2 %vm1364_vm7, %v1355_v13 }
 0x46d   :  { %2494 = vmatmul.msk.bf16.gmra.mxu3 %vm1364_vm7, %v1355_v13 }
 0x47c   :  { %2549 = vmatmul.msk.bf16.vlgmr.msra.gmra.mxu2 %vm1364_vm7, %v1355_v13 }
 0x47d   :  { %1609 = vmatmul.bf16.vlgmr.msra.gmra.mxu3 %v3013_v15 }
 0x48c   :  { %2550 = vmatmul.msk.bf16.gmra.mxu2 %vm1364_vm7, %v1355_v13 }
 0x490   :  { %v2287_v48 = vpop.permute.xlu2 %2286 }
 0x491   :  { %v2289_v51 = vsel %vm487_vm4, %v1316_v27, %v2287_v48 }
 0x492   :  { %v2291_v52 = vsel %vm2290_vm8, %v2289_v51, 0.0 }
 0x493   :  { %2292 = vst [vmem:[%s3748_s26] sm:$0xff] %v2291_v52 }
 0x49c   :  { %2551 = vmatmul.msk.bf16.gmra.mxu2 %vm1364_vm7, %v1355_v13 }
 0x4ac   :  { %2552 = vmatmul.msk.bf16.gmra.mxu2 %vm1364_vm7, %v1355_v13 }
 0x4b9   :  { %v1420_v59 = vpop.f32.mrf.mxu1 }
 0x4bf   :  { %v1450_v39 = vpop.f32.mrf.mxu2 }
 0x4c0   :  { %v1378_v56 = vpop.f32.mrf.mxu3 }
 0x4c1   :  { %v1416_v1 = vadd.f32 %v1415_v53, %v1378_v56  ;;  %v1422_v11 = vpop.f32.mrf.mxu1 }
 0x4c3   :  { %v1470_v57 = vadd.f32 %v1450_v39, %v1416_v1 }
 0x4c5   :  { %v1481_v58 = vadd.f32 %v3550_v5, %v1470_v57 }
 0x4c7   :  { %v1489_v61 = vmax.f32 %v1481_v58, 0.0  ;;  %v1452_v0 = vpop.f32.mrf.mxu2 }
 0x4c8   :  { %v1380_v2 = vpop.f32.mrf.mxu3 }
 0x4c9   :  { %v1497_v3 = vpack.c.bf16 %v1489_v61, %v1489_v61  ;;  %v1418_v4 = vadd.f32 %v1417_v55, %v1380_v2  ;;  %v1425_v24 = vpop.f32.mrf.mxu1 }
 0x4cb   :  { %v1511_v6 = vunpack.c.l.b16 %v1497_v3  ;;  %v1471_v7 = vadd.f32 %v1452_v0, %v1418_v4 }
 0x4cd   :  { %v1522_v20 = vpack.c.b16 %v1511_v6, %v1511_v6  ;;  %v1482_v21 = vadd.f32 %v3550_v5, %v1471_v7 }
 0x4cf   :  { %v1490_v8 = vmax.f32 %v1482_v21, 0.0  ;;  %v1455_v9 = vpop.f32.mrf.mxu2  ;;  %v1527_v10 = vsel %vm284_vm3, 0, %v1522_v20  ;;  %v2676_v21 = vld [vmem:[%s3742_s20 + $0x8] sm:$0xff] }
 0x4d0   :  { %v1383_v12 = vpop.f32.mrf.mxu3  ;;  %2518 = vmatmul.msk.bf16.vlgmr.msra.gmra.mxu0 %vm487_vm4, %v1527_v10  ;;  %1875 = vmatpush.bf16.msrb.mxu3 %v2676_v21 }
 0x4d1   :  { %v1498_v54 = vpack.c.bf16 %v1490_v8, %v1490_v8  ;;  %v1421_v14 = vadd.f32 %v1420_v59, %v1383_v12  ;;  %v1427_v35 = vpop.f32.mrf.mxu1  ;;  %v2675_v12 = vld [vmem:[%s3742_s20] sm:$0xff] }
 0x4d3   :  { %v1512_v63 = vunpack.c.l.b16 %v1498_v54  ;;  %v1472_v31 = vadd.f32 %v1455_v9, %v1421_v14  ;;  %v2677_v54 = vld [vmem:[%s3742_s20 + $0x10] sm:$0xff]  ;;  %v2679_v14 = vld [vmem:[%s3742_s20 + $0x20] sm:$0xff] }
 0x4d4   :  { %1876 = vmatpush.bf16.msrb.mxu3 %v2675_v12 }
 0x4d5   :  { %v1483_v16 = vadd.f32 %v3550_v5, %v1472_v31  ;;  %v1517_v17 = vpack.c.b16 %v1512_v63, %v1511_v6 }
 0x4d7   :  { %v1491_v18 = vmax.f32 %v1483_v16, 0.0  ;;  %v1457_v44 = vpop.f32.mrf.mxu2  ;;  %2530 = vmatmul.msk.bf16.gmra.mxu3 %vm487_vm4, %v1517_v17  ;;  %2541 = vmatmul.msk.bf16.vlgmr.msrb.gmra.mxu1 %vm487_vm4, %v1517_v17 }
 0x4d8   :  { %v1385_v19 = vpop.f32.mrf.mxu3 }
 0x4d9   :  { %v1499_v22 = vpack.c.bf16 %v1491_v18, %v1491_v18  ;;  %v1423_v23 = vadd.f32 %v1422_v11, %v1385_v19  ;;  %v1430_v47 = vpop.f32.mrf.mxu1  ;;  %v2678_v11 = vld [vmem:[%s3742_s20 + $0x18] sm:$0xff] }
 0x4da   :  { %1834 = vmatpush.bf16.msrb.mxu0 %v2678_v11  ;;  %v3593_v19 = vld [vmem:[#allocation7] ss:$0 sm:$0xff] }
 0x4db   :  { %v1513_v34 = vunpack.c.l.b16 %v1499_v22  ;;  %v1473_v25 = vadd.f32 %v1457_v44, %v1423_v23 }
 0x4dd   :  { %v1484_v26 = vadd.f32 %v3550_v5, %v1473_v25  ;;  %v1523_v42 = vpack.c.b16 %v1513_v34, %v1512_v63 }
 0x4de   :  { %1835 = vmatpush.bf16.msrb.mxu0 %v2677_v54 }
 0x4df   :  { %v1492_v27 = vmax.f32 %v1484_v26, 0.0  ;;  %v1460_v28 = vpop.f32.mrf.mxu2 }
 0x4e0   :  { %v1388_v29 = vpop.f32.mrf.mxu3  ;;  %2519 = vmatmul.msk.bf16.gmra.mxu0 %vm487_vm4, %v1523_v42 }
 0x4e1   :  { %v1500_v30 = vpack.c.bf16 %v1492_v27, %v1492_v27  ;;  %v1426_v40 = vadd.f32 %v1425_v24, %v1388_v29  ;;  %v1432_v58 = vpop.f32.mrf.mxu1 }
 0x4e3   :  { %v1514_v32 = vunpack.c.l.b16 %v1500_v30  ;;  %v1474_v33 = vadd.f32 %v1460_v28, %v1426_v40 }
 0x4e5   :  { %v1485_v36 = vadd.f32 %v3550_v5, %v1474_v33  ;;  %v1518_v37 = vpack.c.b16 %v1514_v32, %v1513_v34  ;;  %v3595_v34 = vld [vmem:[#allocation9] ss:$0 sm:$0xff] }
 0x4e7   :  { %v1493_v38 = vmax.f32 %v1485_v36, 0.0  ;;  %v1462_v41 = vpop.f32.mrf.mxu2  ;;  %2531 = vmatmul.msk.bf16.gmra.mxu3 %vm487_vm4, %v1518_v37  ;;  %2542 = vmatmul.msk.bf16.gmra.mxu1 %vm487_vm4, %v1518_v37 }
 0x4e8   :  { %v1390_v13 = vpop.f32.mrf.mxu3 }
 0x4e9   :  { %v1501_v43 = vpack.c.bf16 %v1493_v38, %v1493_v38  ;;  %v1428_v45 = vadd.f32 %v1427_v35, %v1390_v13 }
 0x4eb   :  { %v1515_v62 = vunpack.c.l.b16 %v1501_v43  ;;  %v1475_v46 = vadd.f32 %v1462_v41, %v1428_v45 }
 0x4ed   :  { %v1486_v49 = vadd.f32 %v3550_v5, %v1475_v46  ;;  %v1524_v50 = vpack.c.b16 %v1515_v62, %v1514_v32 }
 0x4ef   :  { %v1494_v60 = vmax.f32 %v1486_v49, 0.0  ;;  %v1465_v48 = vpop.f32.mrf.mxu2 }
 0x4f0   :  { %v1393_v51 = vpop.f32.mrf.mxu3  ;;  %2520 = vmatmul.msk.bf16.gmra.mxu0 %vm487_vm4, %v1524_v50 }
 0x4f1   :  { %v1502_v52 = vpack.c.bf16 %v1494_v60, %v1494_v60  ;;  %v1431_v53 = vadd.f32 %v1430_v47, %v1393_v51 }
 0x4f3   :  { %v1516_v55 = vunpack.c.l.b16 %v1502_v52  ;;  %v1476_v39 = vadd.f32 %v1465_v48, %v1431_v53 }
 0x4f5   :  { %v1487_v56 = vadd.f32 %v3550_v5, %v1476_v39  ;;  %v1519_v1 = vpack.c.b16 %v1516_v55, %v1515_v62 }
 0x4f7   :  { %v1495_v57 = vmax.f32 %v1487_v56, 0.0  ;;  %2532 = vmatmul.msk.bf16.gmra.mxu3 %vm487_vm4, %v1519_v1  ;;  %2543 = vmatmul.msk.bf16.gmra.mxu1 %vm487_vm4, %v1519_v1  ;;  %v1467_v2 = vpop.f32.mrf.mxu2 }
 0x4f8   :  { %v1395_v59 = vpop.f32.mrf.mxu3 }
 0x4f9   :  { %v1503_v61 = vpack.c.bf16 %v1495_v57, %v1495_v57  ;;  %v1433_v0 = vadd.f32 %v1432_v58, %v1395_v59 }
 0x4fb   :  { %v1521_v3 = vunpack.c.l.b16 %v1503_v61  ;;  %v1477_v4 = vadd.f32 %v1467_v2, %v1433_v0 }
 0x4fd   :  { %v1488_v6 = vadd.f32 %v3550_v5, %v1477_v4  ;;  %v1525_v7 = vpack.c.b16 %v1521_v3, %v1516_v55  ;;  %v2680_v5 = vld [vmem:[%s3742_s20 + $0x28] sm:$0xff] }
 0x4fe   :  { %1924 = vmatpush.bf16.msra.mxu1 %v2680_v5 }
 0x4ff   :  { %v1496_v20 = vmax.f32 %v1488_v6, 0.0  ;;  %v1722_v31 = vpop.f32.mrf.mxu2 }
 0x500   :  { %2521 = vmatmul.msk.bf16.gmra.mxu0 %vm487_vm4, %v1525_v7  ;;  %v1610_v63 = vpop.f32.mrf.mxu3  ;;  %v1723_v27 = vadd.f32 %v3595_v34, %v1722_v31 }
 0x501   :  { %v1504_v8 = vpack.c.bf16 %v1496_v20, %v1496_v20 }
 0x502   :  { %1925 = vmatpush.bf16.msra.mxu1 %v2679_v14 }
 0x503   :  { %v1631_v9 = vunpack.c.l.b16 %v1504_v8 }
 0x505   :  { %v1632_v10 = vpack.c.b16 %v1631_v9, %v1521_v3 }
 0x507   :  { %2544 = vmatmul.msk.bf16.gmra.mxu1 %vm487_vm4, %v1632_v10  ;;  %1877 = vmatmul.bf16.vlgmr.msrb.gmra.mxu3 %v3013_v15  ;;  %v1724_v18 = vpop.f32.mrf.mxu2 }
 0x508   :  { %v1612_v17 = vpop.f32.mrf.mxu3  ;;  %v1725_v36 = vadd.f32 %v3595_v34, %v1724_v18 }
 0x50f   :  { %v1727_v29 = vpop.f32.mrf.mxu2 }
 0x510   :  { %1836 = vmatmul.bf16.vlgmr.msrb.gmra.mxu0 %v3013_v15  ;;  %v1728_v55 = vadd.f32 %v3595_v34, %v1727_v29 }
 0x517   :  { %1882 = vmatmul.bf16.gmra.mxu3 %v3013_v15  ;;  %v1729_v47 = vpop.f32.mrf.mxu2 }
 0x518   :  { %v1730_v3 = vadd.f32 %v3595_v34, %v1729_v47  ;;  %v2683_v47 = vld [vmem:[#allocation12 + $0x10] sm:$0xff] }
 0x51f   :  { %v1732_v2 = vpop.f32.mrf.mxu2 }
 0x54d   :  { %v1560_v16 = vpop.f32.mrf.mxu0 }
 0x54e   :  { %v1611_v44 = vadd.f32 %v1610_v63, %v1560_v16  ;;  %v1734_v16 = vpop.f32.mrf.mxu2 }
 0x554   :  { %v1657_v22 = vpop.f32.mrf.mxu1 }
 0x555   :  { %v1677_v23 = vadd.f32 %v1657_v22, %v1611_v44  ;;  %v1562_v24 = vpop.f32.mrf.mxu0 }
 0x556   :  { %v1613_v28 = vadd.f32 %v1612_v17, %v1562_v24  ;;  %v1733_v17 = vadd.f32 %v3595_v34, %v1732_v2 }
 0x557   :  { %v1688_v25 = vadd.f32 %v3593_v19, %v1677_v23 }
 0x559   :  { %v1696_v26 = vmax.f32 %v1688_v25, 0.0 }
 0x55a   :  { %v1615_v42 = vpop.f32.mrf.mxu3 }
 0x55b   :  { %v1742_v40 = vadd.f32 %v1723_v27, %v1696_v26  ;;  %v2684_v26 = vld [vmem:[#allocation12 + $0x18] sm:$0xff]  ;;  %v2682_v27 = vld [vmem:[#allocation12 + $0x8] sm:$0xff] }
 0x55c   :  { %v1659_v30 = vpop.f32.mrf.mxu1  ;;  %2024 = vmatpush.bf16.msrb.mxu2 %v2684_v26  ;;  %2065 = vmatpush.bf16.msra.mxu0 %v2682_v27 }
 0x55d   :  { %v1678_v32 = vadd.f32 %v1659_v30, %v1613_v28  ;;  %v1565_v33 = vpop.f32.mrf.mxu0  ;;  %v3601_v37 = vmax.f32 %v1742_v40, 0.0  ;;  %v1735_v30 = vadd.f32 %v3595_v34, %v1734_v16 }
 0x55e   :  { %v1616_v43 = vadd.f32 %v1615_v42, %v1565_v33  ;;  %v2686_v42 = vld [vmem:[#allocation12 + $0x28] sm:$0xff] }
 0x55f   :  { %v1689_v35 = vadd.f32 %v3593_v19, %v1678_v32  ;;  %v1784_v62 = vpack.c.bf16 %v3601_v37, %v3601_v37  ;;  %2114 = vmatpush.bf16.msra.mxu3 %v2686_v42 }
 0x560   :  { %2025 = vmatpush.bf16.msrb.mxu2 %v2683_v47 }
 0x561   :  { %v1697_v38 = vmax.f32 %v1689_v35, 0.0  ;;  %v1796_v51 = vunpack.c.l.b16 %v1784_v62 }
 0x562   :  { %v1617_v41 = vpop.f32.mrf.mxu3 }
 0x563   :  { %v1743_v13 = vadd.f32 %v1725_v36, %v1697_v38  ;;  %v1737_v36 = vpop.f32.mrf.mxu2  ;;  %2026 = vmatmul.bf16.vlgmr.msrb.gmra.mxu2 %v3013_v15 }
 0x564   :  { %v1662_v45 = vpop.f32.mrf.mxu1 }
 0x565   :  { %v3605_v46 = vmax.f32 %v1743_v13, 0.0  ;;  %v1679_v49 = vadd.f32 %v1662_v45, %v1616_v43  ;;  %v1567_v50 = vpop.f32.mrf.mxu0 }
 0x566   :  { %v1618_v39 = vadd.f32 %v1617_v41, %v1567_v50  ;;  %v2681_v50 = vld [vmem:[#allocation12] sm:$0xff] }
 0x567   :  { %v1785_v60 = vpack.c.bf16 %v3605_v46, %v3605_v46  ;;  %v1690_v48 = vadd.f32 %v3593_v19, %v1679_v49  ;;  %2066 = vmatpush.bf16.msra.mxu0 %v2681_v50 }
 0x569   :  { %v1797_v52 = vunpack.c.l.b16 %v1785_v60  ;;  %v1698_v53 = vmax.f32 %v1690_v48, 0.0  ;;  %v2685_v60 = vld [vmem:[#allocation12 + $0x20] sm:$0xff] }
 0x56a   :  { %v1620_v1 = vpop.f32.mrf.mxu3  ;;  %2115 = vmatpush.bf16.msra.mxu3 %v2685_v60 }
 0x56b   :  { %v1800_v56 = vpack.c.b16 %v1797_v52, %v1796_v51  ;;  %v1744_v58 = vadd.f32 %v1728_v55, %v1698_v53  ;;  %v1738_v55 = vadd.f32 %v3595_v34, %v1737_v36 }
 0x56c   :  { %v1664_v57 = vpop.f32.mrf.mxu1 }
 0x56d   :  { %v1680_v59 = vadd.f32 %v1664_v57, %v1618_v39  ;;  %v1570_v61 = vpop.f32.mrf.mxu0  ;;  %2561 = vmatmul.msk.bf16.gmra.mxu0 %vm487_vm4, %v1800_v56  ;;  %2572 = vmatmul.msk.bf16.gmra.mxu3 %vm487_vm4, %v1800_v56  ;;  %v3616_v4 = vmax.f32 %v1744_v58, 0.0 }
 0x56e   :  { %2582 = vmatmul.msk.bf16.vlgmr.msra.gmra.mxu1 %vm487_vm4, %v1800_v56  ;;  %v1621_v20 = vadd.f32 %v1620_v1, %v1570_v61 }
 0x56f   :  { %v1691_v0 = vadd.f32 %v3593_v19, %v1680_v59  ;;  %v1786_v8 = vpack.c.bf16 %v3616_v4, %v3616_v4  ;;  %v1739_v59 = vpop.f32.mrf.mxu2 }
 0x571   :  { %v1699_v6 = vmax.f32 %v1691_v0, 0.0  ;;  %v1798_v14 = vunpack.c.l.b16 %v1786_v8  ;;  %v1740_v0 = vadd.f32 %v3595_v34, %v1739_v59 }
 0x572   :  { %v1622_v5 = vpop.f32.mrf.mxu3 }
 0x573   :  { %v1745_v7 = vadd.f32 %v1730_v3, %v1699_v6 }
 0x574   :  { %v1667_v21 = vpop.f32.mrf.mxu1 }
 0x575   :  { %v3620_v9 = vmax.f32 %v1745_v7, 0.0  ;;  %v1681_v10 = vadd.f32 %v1667_v21, %v1621_v20  ;;  %v1572_v11 = vpop.f32.mrf.mxu0 }
 0x576   :  { %v1623_v18 = vadd.f32 %v1622_v5, %v1572_v11 }
 0x577   :  { %v1787_v12 = vpack.c.bf16 %v3620_v9, %v3620_v9  ;;  %v1692_v54 = vadd.f32 %v3593_v19, %v1681_v10 }
 0x579   :  { %v1799_v63 = vunpack.c.l.b16 %v1787_v12  ;;  %v1700_v31 = vmax.f32 %v1692_v54, 0.0 }
 0x57a   :  { %v1625_v29 = vpop.f32.mrf.mxu3 }
 0x57b   :  { %v1801_v44 = vpack.c.b16 %v1799_v63, %v1798_v14  ;;  %v1746_v23 = vadd.f32 %v1733_v17, %v1700_v31  ;;  %v3657_v31 = vld [vmem:[#allocation10] ss:$0 sm:$0xff] }
 0x57c   :  { %v1669_v22 = vpop.f32.mrf.mxu1 }
 0x57d   :  { %v1682_v24 = vadd.f32 %v1669_v22, %v1623_v18  ;;  %2562 = vmatmul.msk.bf16.gmra.mxu0 %vm487_vm4, %v1801_v44  ;;  %2573 = vmatmul.msk.bf16.gmra.mxu3 %vm487_vm4, %v1801_v44  ;;  %v1575_v25 = vpop.f32.mrf.mxu0  ;;  %v3631_v40 = vmax.f32 %v1746_v23, 0.0 }
 0x57e   :  { %2583 = vmatmul.msk.bf16.gmra.mxu1 %vm487_vm4, %v1801_v44  ;;  %v1626_v35 = vadd.f32 %v1625_v29, %v1575_v25 }
 0x57f   :  { %v1693_v28 = vadd.f32 %v3593_v19, %v1682_v24  ;;  %v1788_v41 = vpack.c.bf16 %v3631_v40, %v3631_v40 }
 0x581   :  { %v1701_v32 = vmax.f32 %v1693_v28, 0.0  ;;  %v1804_v48 = vunpack.c.l.b16 %v1788_v41 }
 0x582   :  { %v1627_v53 = vpop.f32.mrf.mxu3 }
 0x583   :  { %v1747_v33 = vadd.f32 %v1735_v30, %v1701_v32 }
 0x584   :  { %v1672_v38 = vpop.f32.mrf.mxu1 }
 0x585   :  { %v3635_v13 = vmax.f32 %v1747_v33, 0.0  ;;  %v1683_v43 = vadd.f32 %v1672_v38, %v1626_v35  ;;  %v1577_v49 = vpop.f32.mrf.mxu0 }
 0x586   :  { %v1628_v39 = vadd.f32 %v1627_v53, %v1577_v49 }
 0x587   :  { %v1789_v45 = vpack.c.bf16 %v3635_v13, %v3635_v13  ;;  %v1694_v62 = vadd.f32 %v3593_v19, %v1683_v43 }
 0x589   :  { %v1805_v51 = vunpack.c.l.b16 %v1789_v45  ;;  %v1702_v52 = vmax.f32 %v1694_v62, 0.0 }
 0x58a   :  { %v1878_v34 = vpop.f32.mrf.mxu3 }
 0x58b   :  { %v1806_v56 = vpack.c.b16 %v1805_v51, %v1804_v48  ;;  %v1748_v57 = vadd.f32 %v1738_v55, %v1702_v52 }
 0x58c   :  { %v1674_v1 = vpop.f32.mrf.mxu1 }
 0x58d   :  { %v1684_v58 = vadd.f32 %v1674_v1, %v1628_v39  ;;  %2563 = vmatmul.msk.bf16.gmra.mxu0 %vm487_vm4, %v1806_v56  ;;  %v3646_v2 = vmax.f32 %v1748_v57, 0.0 }
 0x58e   :  { %2584 = vmatmul.msk.bf16.gmra.mxu1 %vm487_vm4, %v1806_v56 }
 0x58f   :  { %v1695_v61 = vadd.f32 %v3593_v19, %v1684_v58  ;;  %v1790_v7 = vpack.c.bf16 %v3646_v2, %v3646_v2  ;;  %v1837_v19 = vpop.f32.mrf.mxu0 }
 0x590   :  { %v1879_v54 = vadd.f32 %v1878_v34, %v1837_v19 }
 0x591   :  { %v1703_v3 = vmax.f32 %v1695_v61, 0.0  ;;  %v1900_v8 = vunpack.c.l.b16 %v1790_v7  ;;  %v2688_v61 = vld [vmem:[#allocation15 + $0x8] sm:$0xff] }
 0x592   :  { %v1880_v12 = vpop.f32.mrf.mxu3  ;;  %2222 = vmatpush.bf16.msrb.mxu1 %v2688_v61 }
 0x593   :  { %v1749_v6 = vadd.f32 %v1740_v0, %v1703_v3 }
 0x595   :  { %v3650_v20 = vmax.f32 %v1749_v6, 0.0  ;;  %v2687_v6 = vld [vmem:[#allocation15] sm:$0xff] }
 0x596   :  { %2223 = vmatpush.bf16.msrb.mxu1 %v2687_v6 }
 0x597   :  { %v1791_v21 = vpack.c.bf16 %v3650_v20, %v3650_v20  ;;  %v1839_v5 = vpop.f32.mrf.mxu0 }
 0x598   :  { %v1881_v44 = vadd.f32 %v1880_v12, %v1839_v5 }
 0x599   :  { %v1901_v10 = vunpack.c.l.b16 %v1791_v21 }
 0x59a   :  { %v1883_v17 = vpop.f32.mrf.mxu3 }
 0x59b   :  { %v1902_v11 = vpack.c.b16 %v1901_v10, %v1900_v8 }
 0x59d   :  { %2067 = vmatmul.bf16.vlgmr.msra.gmra.mxu0 %v3013_v15 }
 0x59e   :  { %2585 = vmatmul.msk.bf16.gmra.mxu1 %vm487_vm4, %v1902_v11 }
 0x5a2   :  { %v1885_v27 = vpop.f32.mrf.mxu3 }
 0x5ad   :  { %2072 = vmatmul.bf16.gmra.mxu0 %v3013_v15 }
 0x5ea   :  { %v1842_v16 = vpop.f32.mrf.mxu0 }
 0x5eb   :  { %v1927_v14 = vpop.f32.mrf.mxu1  ;;  %v1884_v28 = vadd.f32 %v1883_v17, %v1842_v16 }
 0x5ec   :  { %v1947_v63 = vadd.f32 %v1927_v14, %v1879_v54 }
 0x5ee   :  { %v1958_v18 = vadd.f32 %v3657_v31, %v1947_v63 }
 0x5f0   :  { %v1966_v23 = vmax.f32 %v1958_v18, 0.0  ;;  %v1888_v45 = vpop.f32.mrf.mxu3 }
 0x5f2   :  { %v1844_v15 = vpop.f32.mrf.mxu0  ;;  %v1974_v26 = vpack.c.bf16 %v1966_v23, %v1966_v23 }
 0x5f3   :  { %v1929_v22 = vpop.f32.mrf.mxu1  ;;  %v1886_v43 = vadd.f32 %v1885_v27, %v1844_v15 }
 0x5f4   :  { %v1948_v24 = vadd.f32 %v1929_v22, %v1881_v44  ;;  %v1986_v32 = vunpack.c.l.b16 %v1974_v26 }
 0x5f6   :  { %v1959_v25 = vadd.f32 %v3657_v31, %v1948_v24 }
 0x5f8   :  { %v1967_v42 = vmax.f32 %v1959_v25, 0.0  ;;  %v1890_v57 = vpop.f32.mrf.mxu3 }
 0x5fa   :  { %v1975_v29 = vpack.c.bf16 %v1967_v42, %v1967_v42  ;;  %v1847_v41 = vpop.f32.mrf.mxu0 }
 0x5fb   :  { %v1932_v30 = vpop.f32.mrf.mxu1  ;;  %v1889_v51 = vadd.f32 %v1888_v45, %v1847_v41 }
 0x5fc   :  { %v1987_v33 = vunpack.c.l.b16 %v1975_v29  ;;  %v1949_v35 = vadd.f32 %v1932_v30, %v1884_v28 }
 0x5fe   :  { %v1990_v36 = vpack.c.b16 %v1987_v33, %v1986_v32  ;;  %v1960_v38 = vadd.f32 %v3657_v31, %v1949_v35  ;;  %v2027_v33 = vpop.f32.mrf.mxu2 }
 0x600   :  { %2594 = vmatmul.msk.bf16.gmra.mxu2 %vm487_vm4, %v1990_v36  ;;  %2605 = vmatmul.msk.bf16.gmra.mxu0 %vm487_vm4, %v1990_v36  ;;  %v1968_v49 = vmax.f32 %v1960_v38, 0.0  ;;  %v1893_v11 = vpop.f32.mrf.mxu3 }
 0x601   :  { %2615 = vmatmul.msk.bf16.vlgmr.msra.gmra.mxu3 %vm487_vm4, %v1990_v36 }
 0x602   :  { %v1976_v60 = vpack.c.bf16 %v1968_v49, %v1968_v49  ;;  %v1849_v53 = vpop.f32.mrf.mxu0 }
 0x603   :  { %v1934_v62 = vpop.f32.mrf.mxu1  ;;  %v1891_v0 = vadd.f32 %v1890_v57, %v1849_v53 }
 0x604   :  { %v1950_v50 = vadd.f32 %v1934_v62, %v1886_v43  ;;  %v1988_v39 = vunpack.c.l.b16 %v1976_v60  ;;  %v3676_v62 = vld [vmem:[#allocation13] ss:$0 sm:$0xff] }
 0x606   :  { %v1961_v47 = vadd.f32 %v3657_v31, %v1950_v50  ;;  %v2029_v36 = vpop.f32.mrf.mxu2 }
 0x608   :  { %v1969_v48 = vmax.f32 %v1961_v47, 0.0  ;;  %v1895_v22 = vpop.f32.mrf.mxu3 }
 0x60a   :  { %v1977_v52 = vpack.c.bf16 %v1969_v48, %v1969_v48  ;;  %v1852_v8 = vpop.f32.mrf.mxu0 }
 0x60b   :  { %v1937_v55 = vpop.f32.mrf.mxu1  ;;  %v1894_v5 = vadd.f32 %v1893_v11, %v1852_v8 }
 0x60c   :  { %v1989_v56 = vunpack.c.l.b16 %v1977_v52  ;;  %v1951_v1 = vadd.f32 %v1937_v55, %v1889_v51 }
 0x60e   :  { %v1991_v58 = vpack.c.b16 %v1989_v56, %v1988_v39  ;;  %v1962_v59 = vadd.f32 %v3657_v31, %v1951_v1 }
 0x610   :  { %2595 = vmatmul.msk.bf16.gmra.mxu2 %vm487_vm4, %v1991_v58  ;;  %2606 = vmatmul.msk.bf16.gmra.mxu0 %vm487_vm4, %v1991_v58  ;;  %v1970_v7 = vmax.f32 %v1962_v59, 0.0 }
 0x611   :  { %2616 = vmatmul.msk.bf16.gmra.mxu3 %vm487_vm4, %v1991_v58 }
 0x612   :  { %v1978_v19 = vpack.c.bf16 %v1970_v7, %v1970_v7  ;;  %v1854_v18 = vpop.f32.mrf.mxu0 }
 0x613   :  { %v1939_v3 = vpop.f32.mrf.mxu1  ;;  %v1896_v23 = vadd.f32 %v1895_v22, %v1854_v18 }
 0x614   :  { %v1952_v21 = vadd.f32 %v1939_v3, %v1891_v0  ;;  %v1994_v14 = vunpack.c.l.b16 %v1978_v19 }
 0x616   :  { %v1963_v10 = vadd.f32 %v3657_v31, %v1952_v21 }
 0x618   :  { %v1971_v34 = vmax.f32 %v1963_v10, 0.0 }
 0x61a   :  { %v1979_v12 = vpack.c.bf16 %v1971_v34, %v1971_v34  ;;  %v2068_v35 = vpop.f32.mrf.mxu0 }
 0x61b   :  { %v1942_v54 = vpop.f32.mrf.mxu1  ;;  %v2069_v41 = vadd.f32 %v2068_v35, %v2027_v33 }
 0x61c   :  { %v1995_v63 = vunpack.c.l.b16 %v1979_v12  ;;  %v1953_v16 = vadd.f32 %v1942_v54, %v1894_v5 }
 0x61e   :  { %v1996_v17 = vpack.c.b16 %v1995_v63, %v1994_v14  ;;  %v1964_v44 = vadd.f32 %v3657_v31, %v1953_v16 }
 0x620   :  { %2596 = vmatmul.msk.bf16.gmra.mxu2 %vm487_vm4, %v1996_v17  ;;  %v1972_v25 = vmax.f32 %v1964_v44, 0.0 }
 0x621   :  { %2617 = vmatmul.msk.bf16.gmra.mxu3 %vm487_vm4, %v1996_v17 }
 0x622   :  { %v1980_v42 = vpack.c.bf16 %v1972_v25, %v1972_v25  ;;  %v2070_v38 = vpop.f32.mrf.mxu0 }
 0x623   :  { %v1944_v24 = vpop.f32.mrf.mxu1  ;;  %v2071_v47 = vadd.f32 %v2070_v38, %v2029_v36 }
 0x624   :  { %v1954_v15 = vadd.f32 %v1944_v24, %v1896_v23  ;;  %v2090_v29 = vunpack.c.l.b16 %v1980_v42 }
 0x626   :  { %v1965_v26 = vadd.f32 %v3657_v31, %v1954_v15 }
 0x628   :  { %v1973_v27 = vmax.f32 %v1965_v26, 0.0 }
 0x62a   :  { %v1981_v28 = vpack.c.bf16 %v1973_v27, %v1973_v27  ;;  %v2073_v50 = vpop.f32.mrf.mxu0 }
 0x62c   :  { %v2091_v30 = vunpack.c.l.b16 %v1981_v28 }
 0x62e   :  { %v2092_v32 = vpack.c.b16 %v2091_v30, %v2090_v29 }
 0x631   :  { %2618 = vmatmul.msk.bf16.gmra.mxu3 %vm487_vm4, %v2092_v32 }
 0x632   :  { %v2075_v56 = vpop.f32.mrf.mxu0 }
 0x67d   :  { %v2078_v8 = vpop.f32.mrf.mxu0 }
 0x683   :  { %v2032_v49 = vpop.f32.mrf.mxu2 }
 0x684   :  { %v2117_v43 = vpop.f32.mrf.mxu3  ;;  %v2074_v1 = vadd.f32 %v2073_v50, %v2032_v49 }
 0x685   :  { %v2137_v45 = vadd.f32 %v2117_v43, %v2069_v41  ;;  %v2080_v18 = vpop.f32.mrf.mxu0 }
 0x687   :  { %v2148_v31 = vadd.f32 %v3676_v62, %v2137_v45 }
 0x689   :  { %v2156_v48 = vmax.f32 %v2148_v31, 0.0 }
 0x68b   :  { %v2034_v53 = vpop.f32.mrf.mxu2  ;;  %v2164_v55 = vadd.f32 %v2156_v48, %v3601_v37 }
 0x68c   :  { %v2119_v60 = vpop.f32.mrf.mxu3  ;;  %v2076_v21 = vadd.f32 %v2075_v56, %v2034_v53  ;;  %v2729_v53 = vld [vmem:[#allocation16] ss:$0 sm:$0xff] }
 0x68d   :  { %v2138_v51 = vadd.f32 %v2119_v60, %v2071_v47  ;;  %v2172_v59 = vmax.f32 %v2164_v55, 0.0  ;;  %v2083_v42 = vpop.f32.mrf.mxu0 }
 0x68f   :  { %v2149_v52 = vadd.f32 %v3676_v62, %v2138_v51 }
 0x691   :  { %v2157_v39 = vmax.f32 %v2149_v52, 0.0 }
 0x693   :  { %v2165_v57 = vadd.f32 %v2157_v39, %v3605_v46  ;;  %v2037_v7 = vpop.f32.mrf.mxu2 }
 0x694   :  { %v2122_v58 = vpop.f32.mrf.mxu3  ;;  %v2079_v5 = vadd.f32 %v2078_v8, %v2037_v7 }
 0x695   :  { %v2173_v61 = vmax.f32 %v2165_v57, 0.0  ;;  %v2139_v0 = vadd.f32 %v2122_v58, %v2074_v1  ;;  %v2085_v43 = vpop.f32.mrf.mxu0 }
 0x697   :  { %v2185_v3 = vpack.c.bf16 %v2173_v61, %v2172_v59  ;;  %v2150_v6 = vadd.f32 %v3676_v62, %v2139_v0 }
 0x699   :  { %2627 = vmatmul.msk.bf16.vlgmr.msrb.gmra.mxu1 %vm487_vm4, %v2185_v3  ;;  %v2158_v11 = vmax.f32 %v2150_v6, 0.0 }
 0x69b   :  { %v2166_v34 = vadd.f32 %v2158_v11, %v3616_v4  ;;  %v2039_v54 = vpop.f32.mrf.mxu2 }
 0x69c   :  { %v2124_v10 = vpop.f32.mrf.mxu3  ;;  %v2081_v23 = vadd.f32 %v2080_v18, %v2039_v54 }
 0x69d   :  { %v2140_v37 = vadd.f32 %v2124_v10, %v2076_v21  ;;  %v2174_v63 = vmax.f32 %v2166_v34, 0.0 }
 0x69f   :  { %v2151_v19 = vadd.f32 %v3676_v62, %v2140_v37 }
 0x6a1   :  { %v2159_v46 = vmax.f32 %v2151_v19, 0.0 }
 0x6a3   :  { %v2167_v12 = vadd.f32 %v2159_v46, %v3620_v9  ;;  %v2042_v4 = vpop.f32.mrf.mxu2 }
 0x6a4   :  { %v2127_v14 = vpop.f32.mrf.mxu3  ;;  %v2084_v28 = vadd.f32 %v2083_v42, %v2042_v4 }
 0x6a5   :  { %v2175_v16 = vmax.f32 %v2167_v12, 0.0  ;;  %v2141_v17 = vadd.f32 %v2127_v14, %v2079_v5 }
 0x6a7   :  { %v2186_v44 = vpack.c.bf16 %v2175_v16, %v2174_v63  ;;  %v2152_v22 = vadd.f32 %v3676_v62, %v2141_v17 }
 0x6a9   :  { %2628 = vmatmul.msk.bf16.gmra.mxu1 %vm487_vm4, %v2186_v44  ;;  %v2160_v25 = vmax.f32 %v2152_v22, 0.0 }
 0x6ab   :  { %v2168_v9 = vadd.f32 %v2160_v25, %v3631_v40  ;;  %v2044_v38 = vpop.f32.mrf.mxu2 }
 0x6ac   :  { %v2129_v24 = vpop.f32.mrf.mxu3  ;;  %v2086_v45 = vadd.f32 %v2085_v43, %v2044_v38 }
 0x6ad   :  { %v2142_v15 = vadd.f32 %v2129_v24, %v2081_v23  ;;  %v2176_v32 = vmax.f32 %v2168_v9, 0.0 }
 0x6af   :  { %v2153_v26 = vadd.f32 %v3676_v62, %v2142_v15 }
 0x6b1   :  { %v2161_v27 = vmax.f32 %v2153_v26, 0.0 }
 0x6b3   :  { %v2169_v29 = vadd.f32 %v2161_v27, %v3635_v13 }
 0x6b4   :  { %v2132_v30 = vpop.f32.mrf.mxu3 }
 0x6b5   :  { %v2177_v33 = vmax.f32 %v2169_v29, 0.0  ;;  %v2143_v35 = vadd.f32 %v2132_v30, %v2084_v28 }
 0x6b7   :  { %v2187_v36 = vpack.c.bf16 %v2177_v33, %v2176_v32  ;;  %v2154_v41 = vadd.f32 %v3676_v62, %v2143_v35 }
 0x6b9   :  { %2629 = vmatmul.msk.bf16.gmra.mxu1 %vm487_vm4, %v2187_v36  ;;  %v2162_v50 = vmax.f32 %v2154_v41, 0.0 }
 0x6bb   :  { %v2170_v47 = vadd.f32 %v2162_v50, %v3646_v2 }
 0x6bc   :  { %v2134_v49 = vpop.f32.mrf.mxu3 }
 0x6bd   :  { %v2144_v31 = vadd.f32 %v2134_v49, %v2086_v45  ;;  %v2178_v48 = vmax.f32 %v2170_v47, 0.0 }
 0x6bf   :  { %v2155_v40 = vadd.f32 %v3676_v62, %v2144_v31 }
 0x6c1   :  { %v2163_v13 = vmax.f32 %v2155_v40, 0.0 }
 0x6c3   :  { %v2171_v60 = vadd.f32 %v2163_v13, %v3650_v20 }
 0x6c5   :  { %v2179_v51 = vmax.f32 %v2171_v60, 0.0 }
 0x6c7   :  { %v2188_v52 = vpack.c.bf16 %v2179_v51, %v2178_v48 }
 0x6c9   :  { %2630 = vmatmul.msk.bf16.gmra.mxu1 %vm487_vm4, %v2188_v52 }
 0x716   :  { %v2225_v55 = vpop.f32.mrf.mxu1 }
 0x717   :  { %v2226_v39 = vadd.f32 %v2729_v53, %v2225_v55 }
 0x719   :  { %v2245_v56 = vmul.f32 0.5, %v2226_v39 }
 0x71b   :  { %2732 = vtanh.f32 %v2245_v56 }
 0x71e   :  { %v2227_v1 = vpop.f32.mrf.mxu1 }
 0x71f   :  { %v2228_v57 = vadd.f32 %v2729_v53, %v2227_v1 }
 0x721   :  { %v2733_v58 = vpop.eup %2732  ;;  %v2246_v59 = vmul.f32 0.5, %v2228_v57 }
 0x722   :  { %v2261_v62 = vadd.f32 1.0, %v2733_v58 }
 0x723   :  { %2734 = vtanh.f32 %v2246_v59 }
 0x724   :  { %v2269_v2 = vmul.f32 0.5, %v2261_v62 }
 0x726   :  { %2277 = vst [vmem:[%s3749_s27] sm:$0xff] %v2269_v2  ;;  %v2230_v20 = vpop.f32.mrf.mxu1 }
 0x727   :  { %v2231_v61 = vadd.f32 %v2729_v53, %v2230_v20 }
 0x729   :  { %v2735_v0 = vpop.eup %2734  ;;  %v2247_v3 = vmul.f32 0.5, %v2231_v61 }
 0x72a   :  { %v2262_v6 = vadd.f32 1.0, %v2735_v0 }
 0x72b   :  { %2736 = vtanh.f32 %v2247_v3 }
 0x72c   :  { %v2270_v7 = vmul.f32 0.5, %v2262_v6 }
 0x72e   :  { %2278 = vst [vmem:[%s3749_s27 + $0x8] sm:$0xff] %v2270_v7  ;;  %v2232_v21 = vpop.f32.mrf.mxu1 }
 0x72f   :  { %v2233_v8 = vadd.f32 %v2729_v53, %v2232_v21 }
 0x731   :  { %v2737_v10 = vpop.eup %2736  ;;  %v2248_v11 = vmul.f32 0.5, %v2233_v8 }
 0x732   :  { %v2263_v37 = vadd.f32 1.0, %v2737_v10 }
 0x733   :  { %2738 = vtanh.f32 %v2248_v11 }
 0x734   :  { %v2271_v19 = vmul.f32 0.5, %v2263_v37 }
 0x736   :  { %2279 = vst [vmem:[%s3749_s27 + $0x10] sm:$0xff] %v2271_v19  ;;  %v2235_v34 = vpop.f32.mrf.mxu1 }
 0x737   :  { %v2236_v46 = vadd.f32 %v2729_v53, %v2235_v34 }
 0x739   :  { %v2739_v5 = vpop.eup %2738  ;;  %v2249_v12 = vmul.f32 0.5, %v2236_v46 }
 0x73a   :  { %v2264_v54 = vadd.f32 1.0, %v2739_v5 }
 0x73b   :  { %2740 = vtanh.f32 %v2249_v12 }
 0x73c   :  { %v2272_v14 = vmul.f32 0.5, %v2264_v54 }
 0x73e   :  { %2280 = vst [vmem:[%s3749_s27 + $0x18] sm:$0xff] %v2272_v14  ;;  %v2237_v63 = vpop.f32.mrf.mxu1 }
 0x73f   :  { %v2238_v16 = vadd.f32 %v2729_v53, %v2237_v63 }
 0x741   :  { %v2741_v17 = vpop.eup %2740  ;;  %v2250_v18 = vmul.f32 0.5, %v2238_v16 }
 0x742   :  { %v2265_v44 = vadd.f32 1.0, %v2741_v17 }
 0x743   :  { %2742 = vtanh.f32 %v2250_v18 }
 0x744   :  { %v2273_v22 = vmul.f32 0.5, %v2265_v44 }
 0x746   :  { %2281 = vst [vmem:[%s3749_s27 + $0x20] sm:$0xff] %v2273_v22  ;;  %v2240_v23 = vpop.f32.mrf.mxu1 }
 0x747   :  { %v2241_v24 = vadd.f32 %v2729_v53, %v2240_v23 }
 0x749   :  { %v2743_v25 = vpop.eup %2742  ;;  %v2251_v15 = vmul.f32 0.5, %v2241_v24 }
 0x74a   :  { %v2266_v4 = vadd.f32 1.0, %v2743_v25 }
 0x74b   :  { %2744 = vtanh.f32 %v2251_v15 }
 0x74c   :  { %v2274_v26 = vmul.f32 0.5, %v2266_v4 }
 0x74e   :  { %2282 = vst [vmem:[%s3749_s27 + $0x28] sm:$0xff] %v2274_v26  ;;  %v2242_v42 = vpop.f32.mrf.mxu1 }
 0x74f   :  { %v2243_v9 = vadd.f32 %v2729_v53, %v2242_v42 }
 0x751   :  { %v2745_v27 = vpop.eup %2744  ;;  %v2252_v28 = vmul.f32 0.5, %v2243_v9 }
 0x752   :  { %v2267_v29 = vadd.f32 1.0, %v2745_v27 }
 0x753   :  { %2746 = vtanh.f32 %v2252_v28 }
 0x754   :  { %v2275_v30 = vmul.f32 0.5, %v2267_v29 }
 0x756   :  { %2283 = vst [vmem:[%s3749_s27 + $0x30] sm:$0xff] %v2275_v30 }
 0x759   :  { %v2747_v32 = vpop.eup %2746 }
 0x75a   :  { %v2268_v33 = vadd.f32 1.0, %v2747_v32 }
 0x75c   :  { %v2276_v35 = vmul.f32 0.5, %v2268_v33 }
 0x75e   :  { %2284 = vst [vmem:[%s3749_s27 + $0x38] sm:$0xff] %v2276_v35 }
 0x75f   :  { %2301 = vsyncpa [#allocation3], 1 }
 0x760   :  { %2302 = vsyncpa [#allocation5], 1 }
 0x761   :  { %2303 = vsyncpa [#allocation8], 1 }
 0x762   :  { %2304 = vsyncpa [#allocation11], 1 }
 0x763   :  { %2305 = vsyncpa [#allocation14], 1 }
 0x764   :  { %2306 = vsyncpa [#allocation17], 1 }

</bundles_post_ra>
